<compile_context>
chip_gen: v6e
topology: v6e:2x2x1
jax: 0.10.0
libtpu: 0.0.40
codegen_flags: <defaults>
</compile_context>

<pallas_src>
import math

import jax
import jax.numpy as jnp
from jax.experimental import pallas as pl
from jax.experimental.pallas import tpu as pltpu

# ----------------------------- config (small, synthetic) -----------------------------
BATCH = 2
SEQ = 8
BS = BATCH * SEQ
HIDDEN = 32
NUM_HEADS = 2
HEAD_DIM = HIDDEN // NUM_HEADS
INTERMEDIATE = 64
NUM_LAYERS = 2
VOCAB = 50
NUM_CLASSES = 5          # stand-in for len(df_train['RP'].unique())
LN_EPS = 1e-12           # BERT default
NEG_INF = -1e9
# hidden_dropout_prob would be 0.1; dropout is identity at inference (eval) time.

HP = 128                 # lane-padded hidden / generic weight-block width
CP = 128                 # lane-padded classifier width

# lane offsets of K and V inside the fused QKV projection output (Q at [0:32))
OFF_K = HIDDEN           # 32
OFF_V = 2 * HIDDEN       # 64

# weight-slab block indices (each block is (128,128) bf16)
def _wblk_idx(layer, which):     # which: 0 wqkv, 1 wo, 2 w1, 3 w2
    return layer * 4 + which

W_FC = NUM_LAYERS * 4            # classifier weight block index
N_WBLK = NUM_LAYERS * 4 + 1      # 9 blocks

# param-slab row indices (each row is (128,) f32)
ROW_EMB_G, ROW_EMB_B = 0, 1
def _prow_base(layer):           # per-layer rows: +0 bqkv, +1 bo, +2 ln1_g, +3 ln1_b,
    return 2 + layer * 8         #                 +4 b1, +5 b2, +6 ln2_g, +7 ln2_b

ROW_FC_B = 2 + NUM_LAYERS * 8    # 18
N_PROW = ((ROW_FC_B + 1 + 7) // 8) * 8   # 24 (padded to sublane multiple)


def _gelu(x):
    # TODO(synk): HF BERT uses the exact erf-based gelu; tanh approximation used here.
    return 0.5 * x * (1.0 + jnp.tanh(0.7978845608028654 * (x + 0.044715 * x * x * x)))


# ----------------------------- fused encoder + head kernel -----------------------------
def fused_rp_kernel(x_ref, bias_ref, wslab_ref, pslab_ref, out_ref):
    f32, bf16 = jnp.float32, jnp.bfloat16

    x = x_ref[...]            # (BS, 128) f32 embedding sums; padded lanes are zero
    bias = bias_ref[...]      # (BS, BS)  additive mask: 0 keep / -1e9 cross-batch or padding
    ps = pslab_ref[...]       # (24, 128) f32 bias / LayerNorm slab (loaded once)

    def prow(r):              # static (1,128) row view of the small-param slab
        return ps[r:r + 1, :]

    # lane mask so LayerNorm stats only cover the real HIDDEN lanes (hoisted, built once)
    lane = jax.lax.broadcasted_iota(jnp.int32, (BS, HP), 1)
    hid_mask = (lane < HIDDEN).astype(f32)
    inv_h = 1.0 / HIDDEN

    def layernorm(h, gamma, beta):
        # padded lanes of h are exactly zero by construction; gamma/beta are zero there too
        mu = jnp.sum(h, axis=-1, keepdims=True) * inv_h
        c = (h - mu) * hid_mask
        var = jnp.sum(c * c, axis=-1, keepdims=True) * inv_h
        return c * jax.lax.rsqrt(var + LN_EPS) * gamma + beta

    # embeddings LayerNorm (no residual, no zero tensor)
    h = layernorm(x, prow(ROW_EMB_G), prow(ROW_EMB_B))

    for l in range(NUM_LAYERS):              # static unroll; all weights resident in VMEM
        wqkv = wslab_ref[_wblk_idx(l, 0)]    # (128,128) bf16, columns = q|k|v lane-packed
        wo   = wslab_ref[_wblk_idx(l, 1)]
        w1   = wslab_ref[_wblk_idx(l, 2)]
        w2   = wslab_ref[_wblk_idx(l, 3)]
        pb = _prow_base(l)

        # ---- self attention: ONE fused QKV matmul, per-head scores over the folded batch ----
        qkv = jnp.dot(h.astype(bf16), wqkv, preferred_element_type=f32) + prow(pb + 0)
        attn = jnp.zeros((BS, HP), f32)
        for hd in range(NUM_HEADS):
            q_h = qkv[:, hd * HEAD_DIM:(hd + 1) * HEAD_DIM]                       # (BS,16)
            k_h = qkv[:, OFF_K + hd * HEAD_DIM:OFF_K + (hd + 1) * HEAD_DIM]
            v_h = qkv[:, OFF_V + hd * HEAD_DIM:OFF_V + (hd + 1) * HEAD_DIM]
            # 1/sqrt(head_dim) is folded into the Q weights/bias at init
            s = jnp.dot(q_h, k_h.T, preferred_element_type=f32) + bias            # (BS,BS)
            m = jnp.max(s, axis=-1, keepdims=True)
            p = jnp.exp(s - m)
            p = p / jnp.sum(p, axis=-1, keepdims=True)                            # exact divide
            ctx = jnp.dot(p, v_h, preferred_element_type=f32)                     # (BS,16)
            attn = attn + jnp.dot(ctx.astype(bf16),
                                  wo[hd * HEAD_DIM:(hd + 1) * HEAD_DIM, :],
                                  preferred_element_type=f32)                     # (BS,128)
        attn = attn + prow(pb + 1)
        h = layernorm(attn + h, prow(pb + 2), prow(pb + 3))

        # ---- feed-forward ----
        ff = _gelu(jnp.dot(h.astype(bf16), w1, preferred_element_type=f32) + prow(pb + 4))
        ff = jnp.dot(ff.astype(bf16), w2, preferred_element_type=f32) + prow(pb + 5)
        h = layernorm(ff + h, prow(pb + 6), prow(pb + 7))

    # ---- CLS pooling -> dropout (identity at inference) -> classifier ----
    fc_w = wslab_ref[W_FC]
    fc_b = prow(ROW_FC_B)
    for b in range(BATCH):
        cls = h[b * SEQ:b * SEQ + 1, :]                                           # (1,128)
        out_ref[b:b + 1, :] = (
            jnp.dot(cls.astype(bf16), fc_w, preferred_element_type=f32) + fc_b
        ).astype(out_ref.dtype)


# ----------------------------- parameter init (deterministic, pre-packed slabs) -----------------------------
def init_params(key):
    f32 = jnp.float32

    def nrm(k, shape, scale=0.02):
        return (scale * jax.random.normal(k, shape)).astype(f32)

    ks = jax.random.split(key, 6)

    tok_emb = jnp.pad(nrm(ks[0], (VOCAB, HIDDEN)), ((0, 0), (0, HP - HIDDEN)))
    pos_emb = jnp.pad(nrm(ks[1], (SEQ, HIDDEN)), ((0, 0), (0, HP - HIDDEN)))
    type_emb = jnp.pad(nrm(ks[2], (2, HIDDEN)), ((0, 0), (0, HP - HIDDEN)))

    attn_scale = 1.0 / math.sqrt(HEAD_DIM)
    ones_h = jnp.zeros((HP,), f32).at[:HIDDEN].set(1.0)
    zeros_row = jnp.zeros((HP,), f32)

    w_blocks = []
    p_rows = [ones_h, zeros_row]                       # emb_ln gamma / beta

    lkeys = jax.random.split(ks[3], NUM_LAYERS)
    for l in range(NUM_LAYERS):
        kl = jax.random.split(lkeys[l], 12)
        wq = nrm(kl[0], (HIDDEN, HIDDEN))              # columns are head-packed (h*HD + d)
        wk = nrm(kl[1], (HIDDEN, HIDDEN))
        wv = nrm(kl[2], (HIDDEN, HIDDEN))
        wo = nrm(kl[3], (HIDDEN, HIDDEN))              # rows are head-packed
        w1 = nrm(kl[4], (HIDDEN, INTERMEDIATE))
        w2 = nrm(kl[5], (INTERMEDIATE, HIDDEN))
        bq = nrm(kl[6], (HIDDEN,))
        bk = nrm(kl[7], (HIDDEN,))
        bv = nrm(kl[8], (HIDDEN,))
        bo = nrm(kl[9], (HIDDEN,))
        b1 = nrm(kl[10], (INTERMEDIATE,))
        b2 = nrm(kl[11], (HIDDEN,))

        # fused QKV weight block: rows = hidden, columns = [ q(scaled) | k | v | 0-pad ]
        wqkv_blk = jnp.zeros((HP, HP), f32)
        wqkv_blk = wqkv_blk.at[:HIDDEN, 0:HIDDEN].set(attn_scale * wq)
        wqkv_blk = wqkv_blk.at[:HIDDEN, OFF_K:OFF_K + HIDDEN].set(wk)
        wqkv_blk = wqkv_blk.at[:HIDDEN, OFF_V:OFF_V + HIDDEN].set(wv)
        wo_blk = jnp.zeros((HP, HP), f32).at[:HIDDEN, :HIDDEN].set(wo)
        w1_blk = jnp.zeros((HP, HP), f32).at[:HIDDEN, :INTERMEDIATE].set(w1)
        w2_blk = jnp.zeros((HP, HP), f32).at[:INTERMEDIATE, :HIDDEN].set(w2)
        w_blocks += [wqkv_blk, wo_blk, w1_blk, w2_blk]

        bqkv = jnp.zeros((HP,), f32)
        bqkv = bqkv.at[0:HIDDEN].set(attn_scale * bq)
        bqkv = bqkv.at[OFF_K:OFF_K + HIDDEN].set(bk)
        bqkv = bqkv.at[OFF_V:OFF_V + HIDDEN].set(bv)
        p_rows += [
            bqkv,
            jnp.zeros((HP,), f32).at[:HIDDEN].set(bo),
            ones_h, zeros_row,                                           # ln1 gamma / beta
            jnp.zeros((HP,), f32).at[:INTERMEDIATE].set(b1),
            jnp.zeros((HP,), f32).at[:HIDDEN].set(b2),
            ones_h, zeros_row,                                           # ln2 gamma / beta
        ]

    fc_w = nrm(ks[4], (HIDDEN, NUM_CLASSES))
    fc_b = nrm(ks[5], (NUM_CLASSES,))
    w_blocks.append(jnp.zeros((HP, HP), f32).at[:HIDDEN, :NUM_CLASSES].set(fc_w))
    p_rows.append(jnp.zeros((HP,), f32).at[:NUM_CLASSES].set(fc_b))

    while len(p_rows) < N_PROW:                    # pad small-param slab to sublane multiple
        p_rows.append(zeros_row)

    return {
        "tok_emb": tok_emb, "pos_emb": pos_emb, "type_emb": type_emb,
        "wslab": jnp.stack(w_blocks).astype(jnp.bfloat16),   # (9, 128, 128) bf16
        "pslab": jnp.stack(p_rows),                           # (24, 128)     f32
    }


# ----------------------------- forward (wrapper glue around ONE pallas_call) -----------------------------
@jax.jit
def rp_model_forward(params, input_ids, attention_mask, token_type_ids=None):
    # TODO(synk): the original module wraps a *pretrained* HF BERT; a deterministic
    # synthetic BERT-style encoder of matching structure is used instead.
    b, s = input_ids.shape
    if token_type_ids is None:
        token_type_ids = jnp.zeros_like(input_ids)

    # embedding gather + position/type add (XLA glue; no clean tiny-shape Pallas gather)
    x = (params["tok_emb"][input_ids]
         + params["pos_emb"][None, :s, :]
         + params["type_emb"][token_type_ids]).reshape(b * s, HP)        # (B*S, 128) f32

    # additive attention bias over the folded batch: 0 for (same batch & unpadded key),
    # -1e9 otherwise (carries both the block-diagonal batch structure and attention_mask)
    row_batch = jnp.arange(b * s) // s
    same_batch = row_batch[:, None] == row_batch[None, :]
    key_keep = (attention_mask.reshape(b * s) > 0)[None, :]
    mask_bias = jnp.where(same_batch & key_keep, 0.0, NEG_INF).astype(jnp.float32)

    logits_padded = pl.pallas_call(
        fused_rp_kernel,
        out_shape=jax.ShapeDtypeStruct((b, CP), jnp.float32),
        grid=(1,),                                            # whole forward = one grid step
        in_specs=[
            pl.BlockSpec((b * s, HP), lambda i: (0, 0)),          # activations
            pl.BlockSpec((b * s, b * s), lambda i: (0, 0)),       # attention bias
            pl.BlockSpec((N_WBLK, HP, HP), lambda i: (0, 0, 0)),  # bf16 matmul-weight slab
            pl.BlockSpec((N_PROW, HP), lambda i: (0, 0)),         # f32 bias/LayerNorm slab
        ],
        out_specs=pl.BlockSpec((b, CP), lambda i: (0, 0)),
        compiler_params=pltpu.CompilerParams(dimension_semantics=("arbitrary",)),
    )(x, mask_bias, params["wslab"], params["pslab"])

    return logits_padded[:, :NUM_CLASSES]                     # slice padded lanes -> (B, C)


# ----------------------------- main -----------------------------
if __name__ == "__main__":
    root = jax.random.PRNGKey(0)
    k_param, k_ids = jax.random.split(root)

    params = init_params(k_param)

    input_ids = jax.random.randint(k_ids, (BATCH, SEQ), 0, VOCAB, dtype=jnp.int32)
    # second example has two padding tokens at the end to exercise the attention mask
    attention_mask = jnp.array(
        [[1] * SEQ,
         [1] * (SEQ - 2) + [0, 0]], dtype=jnp.int32)

    logits = rp_model_forward(params, input_ids, attention_mask, token_type_ids=None)
    logits = jax.block_until_ready(logits)

    assert logits.shape == (BATCH, NUM_CLASSES)
    assert logits.dtype == jnp.float32
    assert bool(jnp.all(jnp.isfinite(logits)))
    print("KERNEL_OK")
</pallas_src>

<mosaic_0001>
module attributes {stable_mosaic.version = 11 : i64} {
  func.func @fused_rp_kernel(%arg0: i32, %arg1: memref<16x128xf32, #tpu.memory_space<vmem>>, %arg2: memref<16x16xf32, #tpu.memory_space<vmem>>, %arg3: memref<9x128x128xbf16, #tpu.memory_space<vmem>>, %arg4: memref<24x128xf32, #tpu.memory_space<vmem>>, %arg5: memref<2x128xf32, #tpu.memory_space<vmem>>) attributes {dimension_semantics = [#tpu.dimension_semantics<arbitrary>], iteration_bounds = array<i64: 1>, scalar_prefetch = 0 : i64, scratch_operands = 0 : i64, tpu.core_type = #tpu.core_type<tc>, window_params = [{pipeline_mode = #tpu.pipeline_mode<synchronous>, transform_indices = @transform_0, window_bounds = array<i64: 16, 128>}, {pipeline_mode = #tpu.pipeline_mode<synchronous>, transform_indices = @transform_1, window_bounds = array<i64: 16, 16>}, {pipeline_mode = #tpu.pipeline_mode<synchronous>, transform_indices = @transform_2, window_bounds = array<i64: 9, 128, 128>}, {pipeline_mode = #tpu.pipeline_mode<synchronous>, transform_indices = @transform_3, window_bounds = array<i64: 24, 128>}, {pipeline_mode = #tpu.pipeline_mode<synchronous>, transform_indices = @transform_4, window_bounds = array<i64: 2, 128>}]} {
    %c0 = arith.constant 0 : index
    %c0_0 = arith.constant 0 : index
    %0 = vector.load %arg1[%c0, %c0_0] : memref<16x128xf32, #tpu.memory_space<vmem>>, vector<16x128xf32>
    %c0_1 = arith.constant 0 : index
    %c0_2 = arith.constant 0 : index
    %1 = vector.load %arg2[%c0_1, %c0_2] : memref<16x16xf32, #tpu.memory_space<vmem>>, vector<16x16xf32>
    %c0_3 = arith.constant 0 : index
    %c0_4 = arith.constant 0 : index
    %2 = vector.load %arg4[%c0_3, %c0_4] : memref<24x128xf32, #tpu.memory_space<vmem>>, vector<24x128xf32>
    %3 = tpu.iota {dimensions = array<i32: 1>} : vector<16x128xi32>
    %c32_i32 = arith.constant 32 : i32
    %4 = vector.broadcast %c32_i32 : i32 to vector<16x128xi32>
    %5 = arith.cmpi slt, %3, %4 : vector<16x128xi32>
    %6 = arith.extui %5 : vector<16x128xi1> to vector<16x128xi32>
    %7 = arith.sitofp %6 : vector<16x128xi32> to vector<16x128xf32>
    %8 = vector.extract_strided_slice %2 {offsets = [0, 0], sizes = [1, 128], strides = [1, 1]} : vector<24x128xf32> to vector<1x128xf32>
    %9 = vector.extract_strided_slice %2 {offsets = [1, 0], sizes = [1, 128], strides = [1, 1]} : vector<24x128xf32> to vector<1x128xf32>
    %cst = arith.constant dense<0.000000e+00> : vector<16xf32>
    %10 = vector.multi_reduction <add>, %0, %cst [1] : vector<16x128xf32> to vector<16xf32>
    %11 = vector.shape_cast %10 : vector<16xf32> to vector<16x1xf32>
    %cst_5 = arith.constant 3.125000e-02 : f32
    %12 = vector.broadcast %cst_5 : f32 to vector<16x1xf32>
    %13 = arith.mulf %11, %12 : vector<16x1xf32>
    %14 = vector.broadcast %13 : vector<16x1xf32> to vector<16x128xf32>
    %15 = arith.subf %0, %14 : vector<16x128xf32>
    %16 = arith.mulf %15, %7 : vector<16x128xf32>
    %17 = arith.mulf %16, %16 : vector<16x128xf32>
    %cst_6 = arith.constant dense<0.000000e+00> : vector<16xf32>
    %18 = vector.multi_reduction <add>, %17, %cst_6 [1] : vector<16x128xf32> to vector<16xf32>
    %19 = vector.shape_cast %18 : vector<16xf32> to vector<16x1xf32>
    %cst_7 = arith.constant 3.125000e-02 : f32
    %20 = vector.broadcast %cst_7 : f32 to vector<16x1xf32>
    %21 = arith.mulf %19, %20 : vector<16x1xf32>
    %cst_8 = arith.constant 9.99999996E-13 : f32
    %22 = vector.broadcast %cst_8 : f32 to vector<16x1xf32>
    %23 = arith.addf %21, %22 : vector<16x1xf32>
    %24 = math.rsqrt %23 : vector<16x1xf32>
    %25 = vector.broadcast %24 : vector<16x1xf32> to vector<16x128xf32>
    %26 = arith.mulf %16, %25 : vector<16x128xf32>
    %27 = vector.broadcast %8 : vector<1x128xf32> to vector<16x128xf32>
    %28 = arith.mulf %26, %27 : vector<16x128xf32>
    %29 = vector.broadcast %9 : vector<1x128xf32> to vector<16x128xf32>
    %30 = arith.addf %28, %29 : vector<16x128xf32>
    %c0_9 = arith.constant 0 : index
    %c0_10 = arith.constant 0 : index
    %c0_11 = arith.constant 0 : index
    %31 = vector.load %arg3[%c0_9, %c0_10, %c0_11] : memref<9x128x128xbf16, #tpu.memory_space<vmem>>, vector<1x128x128xbf16>
    %32 = vector.shape_cast %31 : vector<1x128x128xbf16> to vector<128x128xbf16>
    %c1 = arith.constant 1 : index
    %c0_12 = arith.constant 0 : index
    %c0_13 = arith.constant 0 : index
    %33 = vector.load %arg3[%c1, %c0_12, %c0_13] : memref<9x128x128xbf16, #tpu.memory_space<vmem>>, vector<1x128x128xbf16>
    %34 = vector.shape_cast %33 : vector<1x128x128xbf16> to vector<128x128xbf16>
    %c2 = arith.constant 2 : index
    %c0_14 = arith.constant 0 : index
    %c0_15 = arith.constant 0 : index
    %35 = vector.load %arg3[%c2, %c0_14, %c0_15] : memref<9x128x128xbf16, #tpu.memory_space<vmem>>, vector<1x128x128xbf16>
    %36 = vector.shape_cast %35 : vector<1x128x128xbf16> to vector<128x128xbf16>
    %c3 = arith.constant 3 : index
    %c0_16 = arith.constant 0 : index
    %c0_17 = arith.constant 0 : index
    %37 = vector.load %arg3[%c3, %c0_16, %c0_17] : memref<9x128x128xbf16, #tpu.memory_space<vmem>>, vector<1x128x128xbf16>
    %38 = vector.shape_cast %37 : vector<1x128x128xbf16> to vector<128x128xbf16>
    %39 = arith.truncf %30 : vector<16x128xf32> to vector<16x128xbf16>
    %cst_18 = arith.constant dense<0.000000e+00> : vector<16x128xf32>
    %40 = tpu.matmul %39, %32, %cst_18 {dimension_numbers = #tpu.dot_dimension_numbers<[1], [0], [0], [1], [0, 0, 1, 1], [], []>} : vector<16x128xbf16>, vector<128x128xbf16>, vector<16x128xf32> -> vector<16x128xf32>
    %41 = vector.extract_strided_slice %2 {offsets = [2, 0], sizes = [1, 128], strides = [1, 1]} : vector<24x128xf32> to vector<1x128xf32>
    %42 = vector.broadcast %41 : vector<1x128xf32> to vector<16x128xf32>
    %43 = arith.addf %40, %42 : vector<16x128xf32>
    %cst_19 = arith.constant 0.000000e+00 : f32
    %44 = vector.broadcast %cst_19 : f32 to vector<16x128xf32>
    %45 = vector.extract_strided_slice %43 {offsets = [0, 0], sizes = [16, 16], strides = [1, 1]} : vector<16x128xf32> to vector<16x16xf32>
    %46 = vector.extract_strided_slice %43 {offsets = [0, 32], sizes = [16, 16], strides = [1, 1]} : vector<16x128xf32> to vector<16x16xf32>
    %47 = vector.extract_strided_slice %43 {offsets = [0, 64], sizes = [16, 16], strides = [1, 1]} : vector<16x128xf32> to vector<16x16xf32>
    %48 = tpu.transpose %46, [1, 0] : vector<16x16xf32> -> vector<16x16xf32>
    %cst_20 = arith.constant dense<0.000000e+00> : vector<16x16xf32>
    %49 = tpu.matmul %45, %48, %cst_20 {dimension_numbers = #tpu.dot_dimension_numbers<[1], [0], [0], [1], [0, 0, 1, 1], [], []>} : vector<16x16xf32>, vector<16x16xf32>, vector<16x16xf32> -> vector<16x16xf32>
    %50 = arith.addf %49, %1 : vector<16x16xf32>
    %cst_21 = arith.constant dense<0xFF800000> : vector<16xf32>
    %51 = vector.multi_reduction <maximumf>, %50, %cst_21 [1] : vector<16x16xf32> to vector<16xf32>
    %52 = vector.shape_cast %51 : vector<16xf32> to vector<16x1xf32>
    %53 = vector.broadcast %52 : vector<16x1xf32> to vector<16x16xf32>
    %54 = arith.subf %50, %53 : vector<16x16xf32>
    %55 = math.exp %54 : vector<16x16xf32>
    %cst_22 = arith.constant dense<0.000000e+00> : vector<16xf32>
    %56 = vector.multi_reduction <add>, %55, %cst_22 [1] : vector<16x16xf32> to vector<16xf32>
    %57 = vector.shape_cast %56 : vector<16xf32> to vector<16x1xf32>
    %58 = vector.broadcast %57 : vector<16x1xf32> to vector<16x16xf32>
    %59 = arith.divf %55, %58 : vector<16x16xf32>
    %cst_23 = arith.constant dense<0.000000e+00> : vector<16x16xf32>
    %60 = tpu.matmul %59, %47, %cst_23 {dimension_numbers = #tpu.dot_dimension_numbers<[1], [0], [0], [1], [0, 0, 1, 1], [], []>} : vector<16x16xf32>, vector<16x16xf32>, vector<16x16xf32> -> vector<16x16xf32>
    %61 = arith.truncf %60 : vector<16x16xf32> to vector<16x16xbf16>
    %62 = vector.extract_strided_slice %34 {offsets = [0, 0], sizes = [16, 128], strides = [1, 1]} : vector<128x128xbf16> to vector<16x128xbf16>
    %cst_24 = arith.constant dense<0.000000e+00> : vector<16x128xf32>
    %63 = tpu.matmul %61, %62, %cst_24 {dimension_numbers = #tpu.dot_dimension_numbers<[1], [0], [0], [1], [0, 0, 1, 1], [], []>} : vector<16x16xbf16>, vector<16x128xbf16>, vector<16x128xf32> -> vector<16x128xf32>
    %64 = arith.addf %44, %63 : vector<16x128xf32>
    %65 = vector.extract_strided_slice %43 {offsets = [0, 16], sizes = [16, 16], strides = [1, 1]} : vector<16x128xf32> to vector<16x16xf32>
    %66 = vector.extract_strided_slice %43 {offsets = [0, 48], sizes = [16, 16], strides = [1, 1]} : vector<16x128xf32> to vector<16x16xf32>
    %67 = vector.extract_strided_slice %43 {offsets = [0, 80], sizes = [16, 16], strides = [1, 1]} : vector<16x128xf32> to vector<16x16xf32>
    %68 = tpu.transpose %66, [1, 0] : vector<16x16xf32> -> vector<16x16xf32>
    %cst_25 = arith.constant dense<0.000000e+00> : vector<16x16xf32>
    %69 = tpu.matmul %65, %68, %cst_25 {dimension_numbers = #tpu.dot_dimension_numbers<[1], [0], [0], [1], [0, 0, 1, 1], [], []>} : vector<16x16xf32>, vector<16x16xf32>, vector<16x16xf32> -> vector<16x16xf32>
    %70 = arith.addf %69, %1 : vector<16x16xf32>
    %cst_26 = arith.constant dense<0xFF800000> : vector<16xf32>
    %71 = vector.multi_reduction <maximumf>, %70, %cst_26 [1] : vector<16x16xf32> to vector<16xf32>
    %72 = vector.shape_cast %71 : vector<16xf32> to vector<16x1xf32>
    %73 = vector.broadcast %72 : vector<16x1xf32> to vector<16x16xf32>
    %74 = arith.subf %70, %73 : vector<16x16xf32>
    %75 = math.exp %74 : vector<16x16xf32>
    %cst_27 = arith.constant dense<0.000000e+00> : vector<16xf32>
    %76 = vector.multi_reduction <add>, %75, %cst_27 [1] : vector<16x16xf32> to vector<16xf32>
    %77 = vector.shape_cast %76 : vector<16xf32> to vector<16x1xf32>
    %78 = vector.broadcast %77 : vector<16x1xf32> to vector<16x16xf32>
    %79 = arith.divf %75, %78 : vector<16x16xf32>
    %cst_28 = arith.constant dense<0.000000e+00> : vector<16x16xf32>
    %80 = tpu.matmul %79, %67, %cst_28 {dimension_numbers = #tpu.dot_dimension_numbers<[1], [0], [0], [1], [0, 0, 1, 1], [], []>} : vector<16x16xf32>, vector<16x16xf32>, vector<16x16xf32> -> vector<16x16xf32>
    %81 = arith.truncf %80 : vector<16x16xf32> to vector<16x16xbf16>
    %82 = vector.extract_strided_slice %34 {offsets = [16, 0], sizes = [16, 128], strides = [1, 1]} : vector<128x128xbf16> to vector<16x128xbf16>
    %cst_29 = arith.constant dense<0.000000e+00> : vector<16x128xf32>
    %83 = tpu.matmul %81, %82, %cst_29 {dimension_numbers = #tpu.dot_dimension_numbers<[1], [0], [0], [1], [0, 0, 1, 1], [], []>} : vector<16x16xbf16>, vector<16x128xbf16>, vector<16x128xf32> -> vector<16x128xf32>
    %84 = arith.addf %64, %83 : vector<16x128xf32>
    %85 = vector.extract_strided_slice %2 {offsets = [3, 0], sizes = [1, 128], strides = [1, 1]} : vector<24x128xf32> to vector<1x128xf32>
    %86 = vector.broadcast %85 : vector<1x128xf32> to vector<16x128xf32>
    %87 = arith.addf %84, %86 : vector<16x128xf32>
    %88 = arith.addf %87, %30 : vector<16x128xf32>
    %89 = vector.extract_strided_slice %2 {offsets = [4, 0], sizes = [1, 128], strides = [1, 1]} : vector<24x128xf32> to vector<1x128xf32>
    %90 = vector.extract_strided_slice %2 {offsets = [5, 0], sizes = [1, 128], strides = [1, 1]} : vector<24x128xf32> to vector<1x128xf32>
    %cst_30 = arith.constant dense<0.000000e+00> : vector<16xf32>
    %91 = vector.multi_reduction <add>, %88, %cst_30 [1] : vector<16x128xf32> to vector<16xf32>
    %92 = vector.shape_cast %91 : vector<16xf32> to vector<16x1xf32>
    %cst_31 = arith.constant 3.125000e-02 : f32
    %93 = vector.broadcast %cst_31 : f32 to vector<16x1xf32>
    %94 = arith.mulf %92, %93 : vector<16x1xf32>
    %95 = vector.broadcast %94 : vector<16x1xf32> to vector<16x128xf32>
    %96 = arith.subf %88, %95 : vector<16x128xf32>
    %97 = arith.mulf %96, %7 : vector<16x128xf32>
    %98 = arith.mulf %97, %97 : vector<16x128xf32>
    %cst_32 = arith.constant dense<0.000000e+00> : vector<16xf32>
    %99 = vector.multi_reduction <add>, %98, %cst_32 [1] : vector<16x128xf32> to vector<16xf32>
    %100 = vector.shape_cast %99 : vector<16xf32> to vector<16x1xf32>
    %cst_33 = arith.constant 3.125000e-02 : f32
    %101 = vector.broadcast %cst_33 : f32 to vector<16x1xf32>
    %102 = arith.mulf %100, %101 : vector<16x1xf32>
    %cst_34 = arith.constant 9.99999996E-13 : f32
    %103 = vector.broadcast %cst_34 : f32 to vector<16x1xf32>
    %104 = arith.addf %102, %103 : vector<16x1xf32>
    %105 = math.rsqrt %104 : vector<16x1xf32>
    %106 = vector.broadcast %105 : vector<16x1xf32> to vector<16x128xf32>
    %107 = arith.mulf %97, %106 : vector<16x128xf32>
    %108 = vector.broadcast %89 : vector<1x128xf32> to vector<16x128xf32>
    %109 = arith.mulf %107, %108 : vector<16x128xf32>
    %110 = vector.broadcast %90 : vector<1x128xf32> to vector<16x128xf32>
    %111 = arith.addf %109, %110 : vector<16x128xf32>
    %112 = arith.truncf %111 : vector<16x128xf32> to vector<16x128xbf16>
    %cst_35 = arith.constant dense<0.000000e+00> : vector<16x128xf32>
    %113 = tpu.matmul %112, %36, %cst_35 {dimension_numbers = #tpu.dot_dimension_numbers<[1], [0], [0], [1], [0, 0, 1, 1], [], []>} : vector<16x128xbf16>, vector<128x128xbf16>, vector<16x128xf32> -> vector<16x128xf32>
    %114 = vector.extract_strided_slice %2 {offsets = [6, 0], sizes = [1, 128], strides = [1, 1]} : vector<24x128xf32> to vector<1x128xf32>
    %115 = vector.broadcast %114 : vector<1x128xf32> to vector<16x128xf32>
    %116 = arith.addf %113, %115 : vector<16x128xf32>
    %cst_36 = arith.constant 5.000000e-01 : f32
    %117 = vector.broadcast %cst_36 : f32 to vector<16x128xf32>
    %118 = arith.mulf %117, %116 : vector<16x128xf32>
    %cst_37 = arith.constant 4.471500e-02 : f32
    %119 = vector.broadcast %cst_37 : f32 to vector<16x128xf32>
    %120 = arith.mulf %119, %116 : vector<16x128xf32>
    %121 = arith.mulf %120, %116 : vector<16x128xf32>
    %122 = arith.mulf %121, %116 : vector<16x128xf32>
    %123 = arith.addf %116, %122 : vector<16x128xf32>
    %cst_38 = arith.constant 0.797884583 : f32
    %124 = vector.broadcast %cst_38 : f32 to vector<16x128xf32>
    %125 = arith.mulf %124, %123 : vector<16x128xf32>
    %126 = math.tanh %125 : vector<16x128xf32>
    %cst_39 = arith.constant 1.000000e+00 : f32
    %127 = vector.broadcast %cst_39 : f32 to vector<16x128xf32>
    %128 = arith.addf %127, %126 : vector<16x128xf32>
    %129 = arith.mulf %118, %128 : vector<16x128xf32>
    %130 = arith.truncf %129 : vector<16x128xf32> to vector<16x128xbf16>
    %cst_40 = arith.constant dense<0.000000e+00> : vector<16x128xf32>
    %131 = tpu.matmul %130, %38, %cst_40 {dimension_numbers = #tpu.dot_dimension_numbers<[1], [0], [0], [1], [0, 0, 1, 1], [], []>} : vector<16x128xbf16>, vector<128x128xbf16>, vector<16x128xf32> -> vector<16x128xf32>
    %132 = vector.extract_strided_slice %2 {offsets = [7, 0], sizes = [1, 128], strides = [1, 1]} : vector<24x128xf32> to vector<1x128xf32>
    %133 = vector.broadcast %132 : vector<1x128xf32> to vector<16x128xf32>
    %134 = arith.addf %131, %133 : vector<16x128xf32>
    %135 = arith.addf %134, %111 : vector<16x128xf32>
    %136 = vector.extract_strided_slice %2 {offsets = [8, 0], sizes = [1, 128], strides = [1, 1]} : vector<24x128xf32> to vector<1x128xf32>
    %137 = vector.extract_strided_slice %2 {offsets = [9, 0], sizes = [1, 128], strides = [1, 1]} : vector<24x128xf32> to vector<1x128xf32>
    %cst_41 = arith.constant dense<0.000000e+00> : vector<16xf32>
    %138 = vector.multi_reduction <add>, %135, %cst_41 [1] : vector<16x128xf32> to vector<16xf32>
    %139 = vector.shape_cast %138 : vector<16xf32> to vector<16x1xf32>
    %cst_42 = arith.constant 3.125000e-02 : f32
    %140 = vector.broadcast %cst_42 : f32 to vector<16x1xf32>
    %141 = arith.mulf %139, %140 : vector<16x1xf32>
    %142 = vector.broadcast %141 : vector<16x1xf32> to vector<16x128xf32>
    %143 = arith.subf %135, %142 : vector<16x128xf32>
    %144 = arith.mulf %143, %7 : vector<16x128xf32>
    %145 = arith.mulf %144, %144 : vector<16x128xf32>
    %cst_43 = arith.constant dense<0.000000e+00> : vector<16xf32>
    %146 = vector.multi_reduction <add>, %145, %cst_43 [1] : vector<16x128xf32> to vector<16xf32>
    %147 = vector.shape_cast %146 : vector<16xf32> to vector<16x1xf32>
    %cst_44 = arith.constant 3.125000e-02 : f32
    %148 = vector.broadcast %cst_44 : f32 to vector<16x1xf32>
    %149 = arith.mulf %147, %148 : vector<16x1xf32>
    %cst_45 = arith.constant 9.99999996E-13 : f32
    %150 = vector.broadcast %cst_45 : f32 to vector<16x1xf32>
    %151 = arith.addf %149, %150 : vector<16x1xf32>
    %152 = math.rsqrt %151 : vector<16x1xf32>
    %153 = vector.broadcast %152 : vector<16x1xf32> to vector<16x128xf32>
    %154 = arith.mulf %144, %153 : vector<16x128xf32>
    %155 = vector.broadcast %136 : vector<1x128xf32> to vector<16x128xf32>
    %156 = arith.mulf %154, %155 : vector<16x128xf32>
    %157 = vector.broadcast %137 : vector<1x128xf32> to vector<16x128xf32>
    %158 = arith.addf %156, %157 : vector<16x128xf32>
    %c4 = arith.constant 4 : index
    %c0_46 = arith.constant 0 : index
    %c0_47 = arith.constant 0 : index
    %159 = vector.load %arg3[%c4, %c0_46, %c0_47] : memref<9x128x128xbf16, #tpu.memory_space<vmem>>, vector<1x128x128xbf16>
    %160 = vector.shape_cast %159 : vector<1x128x128xbf16> to vector<128x128xbf16>
    %c5 = arith.constant 5 : index
    %c0_48 = arith.constant 0 : index
    %c0_49 = arith.constant 0 : index
    %161 = vector.load %arg3[%c5, %c0_48, %c0_49] : memref<9x128x128xbf16, #tpu.memory_space<vmem>>, vector<1x128x128xbf16>
    %162 = vector.shape_cast %161 : vector<1x128x128xbf16> to vector<128x128xbf16>
    %c6 = arith.constant 6 : index
    %c0_50 = arith.constant 0 : index
    %c0_51 = arith.constant 0 : index
    %163 = vector.load %arg3[%c6, %c0_50, %c0_51] : memref<9x128x128xbf16, #tpu.memory_space<vmem>>, vector<1x128x128xbf16>
    %164 = vector.shape_cast %163 : vector<1x128x128xbf16> to vector<128x128xbf16>
    %c7 = arith.constant 7 : index
    %c0_52 = arith.constant 0 : index
    %c0_53 = arith.constant 0 : index
    %165 = vector.load %arg3[%c7, %c0_52, %c0_53] : memref<9x128x128xbf16, #tpu.memory_space<vmem>>, vector<1x128x128xbf16>
    %166 = vector.shape_cast %165 : vector<1x128x128xbf16> to vector<128x128xbf16>
    %167 = arith.truncf %158 : vector<16x128xf32> to vector<16x128xbf16>
    %cst_54 = arith.constant dense<0.000000e+00> : vector<16x128xf32>
    %168 = tpu.matmul %167, %160, %cst_54 {dimension_numbers = #tpu.dot_dimension_numbers<[1], [0], [0], [1], [0, 0, 1, 1], [], []>} : vector<16x128xbf16>, vector<128x128xbf16>, vector<16x128xf32> -> vector<16x128xf32>
    %169 = vector.extract_strided_slice %2 {offsets = [10, 0], sizes = [1, 128], strides = [1, 1]} : vector<24x128xf32> to vector<1x128xf32>
    %170 = vector.broadcast %169 : vector<1x128xf32> to vector<16x128xf32>
    %171 = arith.addf %168, %170 : vector<16x128xf32>
    %cst_55 = arith.constant 0.000000e+00 : f32
    %172 = vector.broadcast %cst_55 : f32 to vector<16x128xf32>
    %173 = vector.extract_strided_slice %171 {offsets = [0, 0], sizes = [16, 16], strides = [1, 1]} : vector<16x128xf32> to vector<16x16xf32>
    %174 = vector.extract_strided_slice %171 {offsets = [0, 32], sizes = [16, 16], strides = [1, 1]} : vector<16x128xf32> to vector<16x16xf32>
    %175 = vector.extract_strided_slice %171 {offsets = [0, 64], sizes = [16, 16], strides = [1, 1]} : vector<16x128xf32> to vector<16x16xf32>
    %176 = tpu.transpose %174, [1, 0] : vector<16x16xf32> -> vector<16x16xf32>
    %cst_56 = arith.constant dense<0.000000e+00> : vector<16x16xf32>
    %177 = tpu.matmul %173, %176, %cst_56 {dimension_numbers = #tpu.dot_dimension_numbers<[1], [0], [0], [1], [0, 0, 1, 1], [], []>} : vector<16x16xf32>, vector<16x16xf32>, vector<16x16xf32> -> vector<16x16xf32>
    %178 = arith.addf %177, %1 : vector<16x16xf32>
    %cst_57 = arith.constant dense<0xFF800000> : vector<16xf32>
    %179 = vector.multi_reduction <maximumf>, %178, %cst_57 [1] : vector<16x16xf32> to vector<16xf32>
    %180 = vector.shape_cast %179 : vector<16xf32> to vector<16x1xf32>
    %181 = vector.broadcast %180 : vector<16x1xf32> to vector<16x16xf32>
    %182 = arith.subf %178, %181 : vector<16x16xf32>
    %183 = math.exp %182 : vector<16x16xf32>
    %cst_58 = arith.constant dense<0.000000e+00> : vector<16xf32>
    %184 = vector.multi_reduction <add>, %183, %cst_58 [1] : vector<16x16xf32> to vector<16xf32>
    %185 = vector.shape_cast %184 : vector<16xf32> to vector<16x1xf32>
    %186 = vector.broadcast %185 : vector<16x1xf32> to vector<16x16xf32>
    %187 = arith.divf %183, %186 : vector<16x16xf32>
    %cst_59 = arith.constant dense<0.000000e+00> : vector<16x16xf32>
    %188 = tpu.matmul %187, %175, %cst_59 {dimension_numbers = #tpu.dot_dimension_numbers<[1], [0], [0], [1], [0, 0, 1, 1], [], []>} : vector<16x16xf32>, vector<16x16xf32>, vector<16x16xf32> -> vector<16x16xf32>
    %189 = arith.truncf %188 : vector<16x16xf32> to vector<16x16xbf16>
    %190 = vector.extract_strided_slice %162 {offsets = [0, 0], sizes = [16, 128], strides = [1, 1]} : vector<128x128xbf16> to vector<16x128xbf16>
    %cst_60 = arith.constant dense<0.000000e+00> : vector<16x128xf32>
    %191 = tpu.matmul %189, %190, %cst_60 {dimension_numbers = #tpu.dot_dimension_numbers<[1], [0], [0], [1], [0, 0, 1, 1], [], []>} : vector<16x16xbf16>, vector<16x128xbf16>, vector<16x128xf32> -> vector<16x128xf32>
    %192 = arith.addf %172, %191 : vector<16x128xf32>
    %193 = vector.extract_strided_slice %171 {offsets = [0, 16], sizes = [16, 16], strides = [1, 1]} : vector<16x128xf32> to vector<16x16xf32>
    %194 = vector.extract_strided_slice %171 {offsets = [0, 48], sizes = [16, 16], strides = [1, 1]} : vector<16x128xf32> to vector<16x16xf32>
    %195 = vector.extract_strided_slice %171 {offsets = [0, 80], sizes = [16, 16], strides = [1, 1]} : vector<16x128xf32> to vector<16x16xf32>
    %196 = tpu.transpose %194, [1, 0] : vector<16x16xf32> -> vector<16x16xf32>
    %cst_61 = arith.constant dense<0.000000e+00> : vector<16x16xf32>
    %197 = tpu.matmul %193, %196, %cst_61 {dimension_numbers = #tpu.dot_dimension_numbers<[1], [0], [0], [1], [0, 0, 1, 1], [], []>} : vector<16x16xf32>, vector<16x16xf32>, vector<16x16xf32> -> vector<16x16xf32>
    %198 = arith.addf %197, %1 : vector<16x16xf32>
    %cst_62 = arith.constant dense<0xFF800000> : vector<16xf32>
    %199 = vector.multi_reduction <maximumf>, %198, %cst_62 [1] : vector<16x16xf32> to vector<16xf32>
    %200 = vector.shape_cast %199 : vector<16xf32> to vector<16x1xf32>
    %201 = vector.broadcast %200 : vector<16x1xf32> to vector<16x16xf32>
    %202 = arith.subf %198, %201 : vector<16x16xf32>
    %203 = math.exp %202 : vector<16x16xf32>
    %cst_63 = arith.constant dense<0.000000e+00> : vector<16xf32>
    %204 = vector.multi_reduction <add>, %203, %cst_63 [1] : vector<16x16xf32> to vector<16xf32>
    %205 = vector.shape_cast %204 : vector<16xf32> to vector<16x1xf32>
    %206 = vector.broadcast %205 : vector<16x1xf32> to vector<16x16xf32>
    %207 = arith.divf %203, %206 : vector<16x16xf32>
    %cst_64 = arith.constant dense<0.000000e+00> : vector<16x16xf32>
    %208 = tpu.matmul %207, %195, %cst_64 {dimension_numbers = #tpu.dot_dimension_numbers<[1], [0], [0], [1], [0, 0, 1, 1], [], []>} : vector<16x16xf32>, vector<16x16xf32>, vector<16x16xf32> -> vector<16x16xf32>
    %209 = arith.truncf %208 : vector<16x16xf32> to vector<16x16xbf16>
    %210 = vector.extract_strided_slice %162 {offsets = [16, 0], sizes = [16, 128], strides = [1, 1]} : vector<128x128xbf16> to vector<16x128xbf16>
    %cst_65 = arith.constant dense<0.000000e+00> : vector<16x128xf32>
    %211 = tpu.matmul %209, %210, %cst_65 {dimension_numbers = #tpu.dot_dimension_numbers<[1], [0], [0], [1], [0, 0, 1, 1], [], []>} : vector<16x16xbf16>, vector<16x128xbf16>, vector<16x128xf32> -> vector<16x128xf32>
    %212 = arith.addf %192, %211 : vector<16x128xf32>
    %213 = vector.extract_strided_slice %2 {offsets = [11, 0], sizes = [1, 128], strides = [1, 1]} : vector<24x128xf32> to vector<1x128xf32>
    %214 = vector.broadcast %213 : vector<1x128xf32> to vector<16x128xf32>
    %215 = arith.addf %212, %214 : vector<16x128xf32>
    %216 = arith.addf %215, %158 : vector<16x128xf32>
    %217 = vector.extract_strided_slice %2 {offsets = [12, 0], sizes = [1, 128], strides = [1, 1]} : vector<24x128xf32> to vector<1x128xf32>
    %218 = vector.extract_strided_slice %2 {offsets = [13, 0], sizes = [1, 128], strides = [1, 1]} : vector<24x128xf32> to vector<1x128xf32>
    %cst_66 = arith.constant dense<0.000000e+00> : vector<16xf32>
    %219 = vector.multi_reduction <add>, %216, %cst_66 [1] : vector<16x128xf32> to vector<16xf32>
    %220 = vector.shape_cast %219 : vector<16xf32> to vector<16x1xf32>
    %cst_67 = arith.constant 3.125000e-02 : f32
    %221 = vector.broadcast %cst_67 : f32 to vector<16x1xf32>
    %222 = arith.mulf %220, %221 : vector<16x1xf32>
    %223 = vector.broadcast %222 : vector<16x1xf32> to vector<16x128xf32>
    %224 = arith.subf %216, %223 : vector<16x128xf32>
    %225 = arith.mulf %224, %7 : vector<16x128xf32>
    %226 = arith.mulf %225, %225 : vector<16x128xf32>
    %cst_68 = arith.constant dense<0.000000e+00> : vector<16xf32>
    %227 = vector.multi_reduction <add>, %226, %cst_68 [1] : vector<16x128xf32> to vector<16xf32>
    %228 = vector.shape_cast %227 : vector<16xf32> to vector<16x1xf32>
    %cst_69 = arith.constant 3.125000e-02 : f32
    %229 = vector.broadcast %cst_69 : f32 to vector<16x1xf32>
    %230 = arith.mulf %228, %229 : vector<16x1xf32>
    %cst_70 = arith.constant 9.99999996E-13 : f32
    %231 = vector.broadcast %cst_70 : f32 to vector<16x1xf32>
    %232 = arith.addf %230, %231 : vector<16x1xf32>
    %233 = math.rsqrt %232 : vector<16x1xf32>
    %234 = vector.broadcast %233 : vector<16x1xf32> to vector<16x128xf32>
    %235 = arith.mulf %225, %234 : vector<16x128xf32>
    %236 = vector.broadcast %217 : vector<1x128xf32> to vector<16x128xf32>
    %237 = arith.mulf %235, %236 : vector<16x128xf32>
    %238 = vector.broadcast %218 : vector<1x128xf32> to vector<16x128xf32>
    %239 = arith.addf %237, %238 : vector<16x128xf32>
    %240 = arith.truncf %239 : vector<16x128xf32> to vector<16x128xbf16>
    %cst_71 = arith.constant dense<0.000000e+00> : vector<16x128xf32>
    %241 = tpu.matmul %240, %164, %cst_71 {dimension_numbers = #tpu.dot_dimension_numbers<[1], [0], [0], [1], [0, 0, 1, 1], [], []>} : vector<16x128xbf16>, vector<128x128xbf16>, vector<16x128xf32> -> vector<16x128xf32>
    %242 = vector.extract_strided_slice %2 {offsets = [14, 0], sizes = [1, 128], strides = [1, 1]} : vector<24x128xf32> to vector<1x128xf32>
    %243 = vector.broadcast %242 : vector<1x128xf32> to vector<16x128xf32>
    %244 = arith.addf %241, %243 : vector<16x128xf32>
    %cst_72 = arith.constant 5.000000e-01 : f32
    %245 = vector.broadcast %cst_72 : f32 to vector<16x128xf32>
    %246 = arith.mulf %245, %244 : vector<16x128xf32>
    %cst_73 = arith.constant 4.471500e-02 : f32
    %247 = vector.broadcast %cst_73 : f32 to vector<16x128xf32>
    %248 = arith.mulf %247, %244 : vector<16x128xf32>
    %249 = arith.mulf %248, %244 : vector<16x128xf32>
    %250 = arith.mulf %249, %244 : vector<16x128xf32>
    %251 = arith.addf %244, %250 : vector<16x128xf32>
    %cst_74 = arith.constant 0.797884583 : f32
    %252 = vector.broadcast %cst_74 : f32 to vector<16x128xf32>
    %253 = arith.mulf %252, %251 : vector<16x128xf32>
    %254 = math.tanh %253 : vector<16x128xf32>
    %cst_75 = arith.constant 1.000000e+00 : f32
    %255 = vector.broadcast %cst_75 : f32 to vector<16x128xf32>
    %256 = arith.addf %255, %254 : vector<16x128xf32>
    %257 = arith.mulf %246, %256 : vector<16x128xf32>
    %258 = arith.truncf %257 : vector<16x128xf32> to vector<16x128xbf16>
    %cst_76 = arith.constant dense<0.000000e+00> : vector<16x128xf32>
    %259 = tpu.matmul %258, %166, %cst_76 {dimension_numbers = #tpu.dot_dimension_numbers<[1], [0], [0], [1], [0, 0, 1, 1], [], []>} : vector<16x128xbf16>, vector<128x128xbf16>, vector<16x128xf32> -> vector<16x128xf32>
    %260 = vector.extract_strided_slice %2 {offsets = [15, 0], sizes = [1, 128], strides = [1, 1]} : vector<24x128xf32> to vector<1x128xf32>
    %261 = vector.broadcast %260 : vector<1x128xf32> to vector<16x128xf32>
    %262 = arith.addf %259, %261 : vector<16x128xf32>
    %263 = arith.addf %262, %239 : vector<16x128xf32>
    %264 = vector.extract_strided_slice %2 {offsets = [16, 0], sizes = [1, 128], strides = [1, 1]} : vector<24x128xf32> to vector<1x128xf32>
    %265 = vector.extract_strided_slice %2 {offsets = [17, 0], sizes = [1, 128], strides = [1, 1]} : vector<24x128xf32> to vector<1x128xf32>
    %cst_77 = arith.constant dense<0.000000e+00> : vector<16xf32>
    %266 = vector.multi_reduction <add>, %263, %cst_77 [1] : vector<16x128xf32> to vector<16xf32>
    %267 = vector.shape_cast %266 : vector<16xf32> to vector<16x1xf32>
    %cst_78 = arith.constant 3.125000e-02 : f32
    %268 = vector.broadcast %cst_78 : f32 to vector<16x1xf32>
    %269 = arith.mulf %267, %268 : vector<16x1xf32>
    %270 = vector.broadcast %269 : vector<16x1xf32> to vector<16x128xf32>
    %271 = arith.subf %263, %270 : vector<16x128xf32>
    %272 = arith.mulf %271, %7 : vector<16x128xf32>
    %273 = arith.mulf %272, %272 : vector<16x128xf32>
    %cst_79 = arith.constant dense<0.000000e+00> : vector<16xf32>
    %274 = vector.multi_reduction <add>, %273, %cst_79 [1] : vector<16x128xf32> to vector<16xf32>
    %275 = vector.shape_cast %274 : vector<16xf32> to vector<16x1xf32>
    %cst_80 = arith.constant 3.125000e-02 : f32
    %276 = vector.broadcast %cst_80 : f32 to vector<16x1xf32>
    %277 = arith.mulf %275, %276 : vector<16x1xf32>
    %cst_81 = arith.constant 9.99999996E-13 : f32
    %278 = vector.broadcast %cst_81 : f32 to vector<16x1xf32>
    %279 = arith.addf %277, %278 : vector<16x1xf32>
    %280 = math.rsqrt %279 : vector<16x1xf32>
    %281 = vector.broadcast %280 : vector<16x1xf32> to vector<16x128xf32>
    %282 = arith.mulf %272, %281 : vector<16x128xf32>
    %283 = vector.broadcast %264 : vector<1x128xf32> to vector<16x128xf32>
    %284 = arith.mulf %282, %283 : vector<16x128xf32>
    %285 = vector.broadcast %265 : vector<1x128xf32> to vector<16x128xf32>
    %286 = arith.addf %284, %285 : vector<16x128xf32>
    %c8 = arith.constant 8 : index
    %c0_82 = arith.constant 0 : index
    %c0_83 = arith.constant 0 : index
    %287 = vector.load %arg3[%c8, %c0_82, %c0_83] : memref<9x128x128xbf16, #tpu.memory_space<vmem>>, vector<1x128x128xbf16>
    %288 = vector.shape_cast %287 : vector<1x128x128xbf16> to vector<128x128xbf16>
    %289 = vector.extract_strided_slice %2 {offsets = [18, 0], sizes = [1, 128], strides = [1, 1]} : vector<24x128xf32> to vector<1x128xf32>
    %290 = vector.extract_strided_slice %286 {offsets = [0, 0], sizes = [1, 128], strides = [1, 1]} : vector<16x128xf32> to vector<1x128xf32>
    %291 = arith.truncf %290 : vector<1x128xf32> to vector<1x128xbf16>
    %cst_84 = arith.constant dense<0.000000e+00> : vector<1x128xf32>
    %292 = tpu.matmul %291, %288, %cst_84 {dimension_numbers = #tpu.dot_dimension_numbers<[1], [0], [0], [1], [0, 0, 1, 1], [], []>} : vector<1x128xbf16>, vector<128x128xbf16>, vector<1x128xf32> -> vector<1x128xf32>
    %293 = arith.addf %292, %289 : vector<1x128xf32>
    %c0_85 = arith.constant 0 : index
    %c0_86 = arith.constant 0 : index
    %294 = vector.load %arg5[%c0_85, %c0_86] : memref<2x128xf32, #tpu.memory_space<vmem>>, vector<1x128xf32>
    tpu.vector_store %arg5[%c0_85, %c0_86], %293 {strides = array<i32>} : memref<2x128xf32, #tpu.memory_space<vmem>>, vector<1x128xf32>,
    %295 = vector.extract_strided_slice %286 {offsets = [8, 0], sizes = [1, 128], strides = [1, 1]} : vector<16x128xf32> to vector<1x128xf32>
    %296 = arith.truncf %295 : vector<1x128xf32> to vector<1x128xbf16>
    %cst_87 = arith.constant dense<0.000000e+00> : vector<1x128xf32>
    %297 = tpu.matmul %296, %288, %cst_87 {dimension_numbers = #tpu.dot_dimension_numbers<[1], [0], [0], [1], [0, 0, 1, 1], [], []>} : vector<1x128xbf16>, vector<128x128xbf16>, vector<1x128xf32> -> vector<1x128xf32>
    %298 = arith.addf %297, %289 : vector<1x128xf32>
    %c1_88 = arith.constant 1 : index
    %c0_89 = arith.constant 0 : index
    %299 = vector.load %arg5[%c1_88, %c0_89] : memref<2x128xf32, #tpu.memory_space<vmem>>, vector<1x128xf32>
    tpu.vector_store %arg5[%c1_88, %c0_89], %298 {strides = array<i32>} : memref<2x128xf32, #tpu.memory_space<vmem>>, vector<1x128xf32>,
    return
  }
  func.func @transform_0(%arg0: i32) -> (i32, i32) {
    %c0_i32 = arith.constant 0 : i32
    %c0_i32_0 = arith.constant 0 : i32
    %c0_i32_1 = arith.constant 0 : i32
    return %c0_i32, %c0_i32_0 : i32, i32
  }
  func.func @transform_1(%arg0: i32) -> (i32, i32) {
    %c0_i32 = arith.constant 0 : i32
    %c0_i32_0 = arith.constant 0 : i32
    %c0_i32_1 = arith.constant 0 : i32
    return %c0_i32, %c0_i32_0 : i32, i32
  }
  func.func @transform_2(%arg0: i32) -> (i32, i32, i32) {
    %c0_i32 = arith.constant 0 : i32
    %c0_i32_0 = arith.constant 0 : i32
    %c0_i32_1 = arith.constant 0 : i32
    %c0_i32_2 = arith.constant 0 : i32
    return %c0_i32, %c0_i32_0, %c0_i32_1 : i32, i32, i32
  }
  func.func @transform_3(%arg0: i32) -> (i32, i32) {
    %c0_i32 = arith.constant 0 : i32
    %c0_i32_0 = arith.constant 0 : i32
    %c0_i32_1 = arith.constant 0 : i32
    return %c0_i32, %c0_i32_0 : i32, i32
  }
  func.func @transform_4(%arg0: i32) -> (i32, i32) {
    %c0_i32 = arith.constant 0 : i32
    %c0_i32_0 = arith.constant 0 : i32
    %c0_i32_1 = arith.constant 0 : i32
    return %c0_i32, %c0_i32_0 : i32, i32
  }
}

</mosaic_0001>

<bundles_post_ra>
// kernel: rp_model_forward.1
= control target key start
LH: loop header
LB: loop body
LE: loop exit
PB: predicated region body
PF: predicated region fallthrough
CT: control target
= control target key end

     0   :  { %9 = vsyncpa [#allocation3], 0  ;;  %s3120_s0 = inlined_call_operand.vmem [shape: f32[16,128], index: 0, kind: input, shape index: {}]   ;;  %s3121_s1 = inlined_call_operand.vmem [shape: f32[16,16], index: 1, kind: input, shape index: {}]   ;;  %s3122_s2 = inlined_call_operand.hbm [shape: bf16[9,128,128], index: 2, kind: input, shape index: {}]   ;;  %s3123_s3 = inlined_call_operand.vmem [shape: f32[24,128], index: 3, kind: input, shape index: {}]   ;;  %s3124_s4 = inlined_call_operand.hbm [shape: f32[2,128], index: 4, kind: output, shape index: {}]  }
   0x1   :  { %10 = vsyncpa [#allocation4], 0  ;;  %s2739_s15 = smov [#allocation2]  }
   0x2   :  { %s20_s16 = sshll.u32 %s2739_s15, 4  ;;  %s21_s16 = int_to_ptr.vmem [resolvable:$true] %s20_s16 }
   0x3   :  { %s2703_s17 = scalar_lea.vmem %s21_s16, 9216  ;;  %p2708_p1 = scmp.lt.s32.totalorder %s21_s16, %s21_s16 }
   0x4   :  { %p2704_p0 = scmp.ne.s32.totalorder %s21_s16, %s2703_s17  ;;  %p2709_p2 = scmp.lt.s32.totalorder %s2703_s17, %s2703_s17 }
   0x6   :  { %p2710_p3 = por %p2709_p2, %p2708_p1 }
   0x8   :  { %p2711_p4 = pnand %p2710_p3, %p2704_p0 }
   0xa   :  { %2714 = shalt.err (!%p2711_p4)
}
   0xb   :  { %s2740_s18 = smov 64   ;;  %s2741_s19 = smov 4  }
   0xc   :  { %26 = dma.hbm_to_vmem [thread:$0]  %s3122_s2, 9216, %s21_s16, [#allocation3], %s2740_s18, %s2740_s18, %s2741_s19  }
   0xd   :  { %2735 = dma.done.wait [#allocation3], 9216  }
   0xe   :  { %2736 = vsyncadd [#allocation3], 4294958080  ;;  %v33_v0 = vld [vmem:[%s3120_s0] sm:$0xff]  ;;  %v34_v1 = vld [vmem:[%s3120_s0 + $0x8] sm:$0xff]  ;;  %v2742_v2 = vmov 0.0   ;;  %v40_v4 = vlaneseq  ;;  %vm2743_vm1 = vmmov 0  }
   0xf   :  { %45 = vadd.xlane.f32.xlu0 %v33_v0  ;;  %2325 = vmatprep.subr.bf16.mxu0 %v2742_v2  ;;  %v2575_v3 = vld [vmem:[#allocation2 + $0x38] sm:$0xff]   ;;  %v2576_v17 = vld [vmem:[#allocation2 + $0x30] sm:$0xff]   ;;  %v2577_v18 = vld [vmem:[#allocation2 + $0x28] sm:$0xff]   ;;  %vm236_vm2 = vcmask 130048   ;;  %s2744_s26 = smov 96   ;;  %s2746_s5 = smov 112  }
  0x10   :  { %2326 = vmatpush3.bf16.msra.mxu0 %v2575_v3  ;;  %v41_v5 = vand.u32 127, %v40_v4  ;;  %v2578_v19 = vld [vmem:[#allocation2 + $0x20] sm:$0xff]   ;;  %2341 = vmatprep.mubr.msk.bf16.mxu0 %vm2743_vm1, %v2742_v2  ;;  %v2579_v20 = vld [vmem:[#allocation2 + $0x18] sm:$0xff]   ;;  %v2580_v21 = vld [vmem:[#allocation2 + $0x10] sm:$0xff]   ;;  %v2801_v30 = vshrl.u32 %v40_v4, 7  ;;  %s2747_s6 = smov 48  }
  0x11   :  { %2327 = vmatprep.subr.bf16.mxu0 %v2742_v2  ;;  %v2581_v22 = vld [vmem:[#allocation2 + $0x8] sm:$0xff]   ;;  %v2582_v23 = vld [vmem:[#allocation2] sm:$0xff]  }
  0x12   :  { %vm42_vm0 = vcmp.lt.s32.totalorder %v41_v5, 32  ;;  %v2804_v31 = vsub.s32 0, %v2801_v30  ;;  %v2809_v32 = vld [vmem:[%s3123_s3] sm:$0xff]  ;;  %v2814_v36 = vsub.s32 1, %v2801_v30  ;;  %v139_v45 = vsub.s32 2, %v2801_v30  ;;  %v2849_v55 = vld [vmem:[%s3121_s1 + $0x8] sm:$0xff] }
  0x13   :  { %47 = vadd.xlane.f32.xlu0 %v34_v1  ;;  %v2788_v8 = vsel %vm42_vm0, 1.0, %v2742_v2  ;;  %v2854_v57 = vld [vmem:[%s3121_s1] sm:$0xff]  ;;  %s2745_s1 = smov 80  }
  0x14   :  { %2328 = vmatpush3.bf16.msra.mxu0 %v2576_v17  ;;  %v72_v35 = vrot.slane %v2809_v32, %v2804_v31  ;;  %v78_v40 = vrot.slane %v2809_v32, %v2814_v36  ;;  %v140_v46 = vrot.slane %v2809_v32, %v139_v45 }
  0x15   :  { %2329 = vmatprep.subr.bf16.mxu0 %v2742_v2 }
  0x18   :  { %2330 = vmatpush3.bf16.msra.mxu0 %v2577_v18 }
  0x19   :  { %2331 = vmatprep.subr.bf16.mxu0 %v2742_v2 }
  0x1c   :  { %2332 = vmatpush3.bf16.msra.mxu0 %v2578_v19 }
  0x1d   :  { %2333 = vmatprep.subr.bf16.mxu0 %v2742_v2 }
  0x20   :  { %2334 = vmatpush3.bf16.msra.mxu0 %v2579_v20 }
  0x21   :  { %2335 = vmatprep.subr.bf16.mxu0 %v2742_v2 }
  0x24   :  { %2336 = vmatpush3.bf16.msra.mxu0 %v2580_v21 }
  0x25   :  { %2337 = vmatprep.subr.bf16.mxu0 %v2742_v2 }
  0x28   :  { %2338 = vmatpush3.bf16.msra.mxu0 %v2581_v22 }
  0x29   :  { %2339 = vmatprep.subr.bf16.mxu0 %v2742_v2 }
  0x2c   :  { %2340 = vmatpush3.bf16.msra.mxu0 %v2582_v23 }
  0x2d   :  { %2385 = vmatprep.subr.bf16.mxu0 %v2742_v2 }
  0x98   :  { %v46_v6 = vpop.xlane.xlu0 %45 }
  0x99   :  { %v49_v7 = vmul.f32 0.03125, %v46_v6 }
  0x9b   :  { %v51_v9 = vsub.f32 %v33_v0, %v49_v7 }
  0x9c   :  { %v48_v10 = vpop.xlane.xlu0 %47 }
  0x9d   :  { %v50_v11 = vmul.f32 0.03125, %v48_v10  ;;  %v53_v12 = vmul.f32 %v2788_v8, %v51_v9 }
  0x9f   :  { %v52_v13 = vsub.f32 %v34_v1, %v50_v11  ;;  %v55_v14 = vmul.f32 %v53_v12, %v53_v12 }
  0xa1   :  { %57 = vadd.xlane.f32.xlu1 %v55_v14  ;;  %v54_v15 = vmul.f32 %v2788_v8, %v52_v13 }
  0xa3   :  { %v56_v16 = vmul.f32 %v54_v15, %v54_v15 }
  0xa5   :  { %59 = vadd.xlane.f32.xlu1 %v56_v16 }
 0x12a   :  { %v58_v24 = vpop.xlane.xlu1 %57 }
 0x12b   :  { %v61_v25 = vmul.f32 0.03125, %v58_v24 }
 0x12d   :  { %v63_v26 = vadd.f32 1e-12, %v61_v25 }
 0x12e   :  { %v60_v27 = vpop.xlane.xlu1 %59 }
 0x12f   :  { %2635 = vrsqrt.f32 %v63_v26  ;;  %v62_v28 = vmul.f32 0.03125, %v60_v27 }
 0x131   :  { %v64_v29 = vadd.f32 1e-12, %v62_v28 }
 0x133   :  { %2637 = vrsqrt.f32 %v64_v29 }
 0x13c   :  { %v2636_v33 = vpop.eup %2635 }
 0x13d   :  { %v67_v34 = vmul.f32 %v2636_v33, %v53_v12 }
 0x13f   :  { %v73_v39 = vmul.f32 %v72_v35, %v67_v34 }
 0x140   :  { %v2638_v37 = vpop.eup %2637 }
 0x141   :  { %v68_v38 = vmul.f32 %v2638_v37, %v54_v15  ;;  %v2818_v42 = vadd.f32 %v78_v40, %v73_v39 }
 0x143   :  { %v74_v41 = vmul.f32 %v72_v35, %v68_v38 }
 0x145   :  { %v2820_v43 = vadd.f32 %v78_v40, %v74_v41 }
 0x147   :  { %v136_v44 = vpack.c.bf16 %v2820_v43, %v2818_v42 }
 0x149   :  { %2342 = vmatmul.mubr.bf16.vlgmr.msra.gmra.mxu0 %v136_v44 }
 0x14a   :  { %2401 = vmatprep.mubr.msk.bf16.mxu0 %vm2743_vm1, %v2742_v2 }
 0x209   :  { %v223_v47 = vpop.f32.mrf.mxu0 }
 0x20a   :  { %v2830_v48 = vadd.f32 %v223_v47, %v140_v46 }
 0x20b   :  { %v2343_v49 = vpop.f32.mrf.mxu0 }
 0x20c   :  { %232 = vrot.lane.b32.xlu1 %v2830_v48, %s2744_s26  ;;  %2349 = vmatprep.mubr.msk.f32.mxu1 %vm236_vm2, %v2830_v48 }
 0x20d   :  { %v226_v50 = vpop.f32.mrf.mxu0 }
 0x20e   :  { %v2836_v51 = vadd.f32 %v226_v50, %v140_v46 }
 0x20f   :  { %v2344_v52 = vpop.f32.mrf.mxu0 }
 0x210   :  { %234 = vrot.lane.b32.xlu0 %v2836_v51, %s2744_s26 }
 0x27e   :  { %v233_v54 = vpop.permute.xlu1 %232 }
 0x282   :  { %v235_v53 = vpop.permute.xlu0 %234 }
 0x283   :  { %2345 = vmatprep.subr.msk.mxu1 %vm236_vm2, %v235_v53 }
 0x284   :  { %2346 = vmatpush3.xpose.msk.msra.mxu1 %vm236_vm2, %v235_v53 }
 0x285   :  { %2347 = vmatprep.subr.msk.mxu1 %vm236_vm2, %v233_v54 }
 0x288   :  { %2348 = vmatpush3.xpose.msk.msra.mxu1 %vm236_vm2, %v233_v54 }
 0x28b   :  { %2350 = vmatmul.mubr.msk.f32.vlgmr.msra.gmra.mxu1 %vm236_vm2, %v2836_v51 }
 0x34b   :  { %v2351_v56 = vpop.f32.mrf.mxu1 }
 0x34c   :  { %v317_v58 = vadd.f32 %v2351_v56, %v2849_v55 }
 0x34d   :  { %v311_v59 = vpop.f32.mrf.mxu1 }
 0x34e   :  { %v312_v60 = vadd.f32 %v311_v59, %v2854_v57  ;;  %v323_v61 = vsel %vm236_vm2, %v317_v58, -inf }
 0x34f   :  { %324 = vmax.xlane.f32.xlu0 %v323_v61 }
 0x350   :  { %v320_v62 = vsel %vm236_vm2, %v312_v60, -inf }
 0x351   :  { %321 = vmax.xlane.f32.xlu1 %v320_v62  ;;  %v2584_v62 = vld [vmem:[#allocation2 + $0x40] sm:$0xff]  }
 0x3d8   :  { %v325_v63 = vpop.xlane.xlu0 %324 }
 0x3d9   :  { %v327_v0 = vsub.f32 %v317_v58, %v325_v63 }
 0x3da   :  { %v322_v1 = vpop.xlane.xlu1 %321 }
 0x3db   :  { %v330_v3 = vmul.f32 1.442695, %v327_v0  ;;  %v326_v4 = vsub.f32 %v312_v60, %v322_v1 }
 0x3dd   :  { %2639 = vpow2.f32 %v330_v3  ;;  %v328_v5 = vmul.f32 1.442695, %v326_v4  ;;  %v733_v3 = vsub.s32 3, %v2801_v30 }
 0x3df   :  { %2641 = vpow2.f32 %v328_v5 }
 0x3ea   :  { %v2640_v6 = vpop.eup %2639 }
 0x3eb   :  { %v335_v7 = vsel %vm236_vm2, %v2640_v6, 0.0 }
 0x3ec   :  { %v2642_v9 = vpop.eup %2641  ;;  %336 = vadd.xlane.f32.xlu1 %v335_v7 }
 0x3ed   :  { %v332_v10 = vsel %vm236_vm2, %v2642_v9, 0.0 }
 0x3ee   :  { %333 = vadd.xlane.f32.xlu0 %v332_v10 }
 0x3fd   :  { %342 = vrot.lane.b32.xlu1 %v2830_v48, %s2740_s18 }
 0x401   :  { %436 = vrot.lane.b32.xlu1 %v2836_v51, %s2745_s1 }
 0x404   :  { %344 = vrot.lane.b32.xlu0 %v2836_v51, %s2740_s18 }
 0x405   :  { %434 = vrot.lane.b32.xlu1 %v2830_v48, %s2745_s1 }
 0x408   :  { %430 = vrot.lane.b32.xlu0 %v2830_v48, %s2746_s5 }
 0x409   :  { %432 = vrot.lane.b32.xlu1 %v2836_v51, %s2746_s5 }
 0x475   :  { %v337_v11 = vpop.xlane.xlu1 %336 }
 0x476   :  { %2643 = vrcp.f32 %v337_v11 }
 0x477   :  { %v334_v12 = vpop.xlane.xlu0 %333 }
 0x478   :  { %2645 = vrcp.f32 %v334_v12 }
 0x479   :  { %v343_v13 = vpop.permute.xlu1 %342 }
 0x47b   :  { %v345_v14 = vpop.permute.xlu0 %344 }
 0x47c   :  { %2352 = vmatprep.subr.mxu1 %v345_v14 }
 0x47d   :  { %2353 = vmatpush3.msra.mxu1 %v345_v14  ;;  %v437_v15 = vpop.permute.xlu1 %436 }
 0x47e   :  { %2354 = vmatprep.subr.mxu1 %v343_v13 }
 0x47f   :  { %2355 = vmatpush3.msra.mxu1 %v343_v13  ;;  %v431_v20 = vpop.permute.xlu0 %430 }
 0x480   :  { %2359 = vmatprep.subr.msk.mxu1 %vm236_vm2, %v437_v15 }
 0x481   :  { %v435_v21 = vpop.permute.xlu1 %434 }
 0x483   :  { %v2644_v16 = vpop.eup %2643 }
 0x484   :  { %v341_v19 = vmul.f32 %v2644_v16, %v2640_v6  ;;  %v734_v6 = vrot.slane %v2809_v32, %v733_v3 }
 0x485   :  { %v2646_v17 = vpop.eup %2645  ;;  %v433_v22 = vpop.permute.xlu1 %432 }
 0x486   :  { %v339_v18 = vmul.f32 %v2646_v17, %v2642_v9 }
 0x488   :  { %2356 = vmatprep.mubr.msk.f32.mxu1 %vm236_vm2, %v339_v18  ;;  %v2585_v18 = vld [vmem:[#allocation2 + $0xb8] sm:$0xff]  }
 0x489   :  { %2357 = vmatmul.mubr.msk.f32.vlgmr.msra.gmra.mxu1 %vm236_vm2, %v341_v19  ;;  %2386 = vmatpush3.bf16.msra.mxu0 %v2585_v18 }
 0x48a   :  { %2360 = vmatpush3.xpose.msk.msra.mxu1 %vm236_vm2, %v437_v15  ;;  %2363 = vmatprep.mubr.msk.f32.mxu1 %vm236_vm2, %v431_v20 }
 0x48b   :  { %2361 = vmatprep.subr.msk.mxu1 %vm236_vm2, %v435_v21  ;;  %2387 = vmatprep.subr.bf16.mxu0 %v2742_v2 }
 0x48e   :  { %2362 = vmatpush3.xpose.msk.msra.mxu1 %vm236_vm2, %v435_v21 }
 0x491   :  { %2364 = vmatmul.mubr.msk.f32.vlgmr.msra.gmra.mxu1 %vm236_vm2, %v433_v22 }
 0x549   :  { %v2358_v23 = vpop.f32.mrf.mxu1 }
 0x54b   :  { %v420_v24 = vpop.f32.mrf.mxu1 }
 0x54c   :  { %v429_v25 = vpack.c.bf16 %v2358_v23, %v420_v24 }
 0x551   :  { %v2365_v26 = vpop.f32.mrf.mxu1 }
 0x552   :  { %v518_v27 = vadd.f32 %v2365_v26, %v2849_v55 }
 0x553   :  { %v512_v28 = vpop.f32.mrf.mxu1 }
 0x554   :  { %v513_v29 = vadd.f32 %v512_v28, %v2854_v57  ;;  %v524_v33 = vsel %vm236_vm2, %v518_v27, -inf  ;;  %v2587_v28 = vld [vmem:[#allocation2 + $0xa8] sm:$0xff]  }
 0x555   :  { %525 = vmax.xlane.f32.xlu1 %v524_v33  ;;  %v2589_v33 = vld [vmem:[#allocation2 + $0x98] sm:$0xff]  }
 0x556   :  { %v521_v34 = vsel %vm236_vm2, %v513_v29, -inf }
 0x557   :  { %522 = vmax.xlane.f32.xlu0 %v521_v34  ;;  %v2590_v34 = vld [vmem:[#allocation2 + $0x90] sm:$0xff]  }
 0x566   :  { %543 = vrot.lane.b32.xlu1 %v2830_v48, %s2747_s6 }
 0x5de   :  { %v526_v35 = vpop.xlane.xlu1 %525 }
 0x5df   :  { %v528_v37 = vsub.f32 %v518_v27, %v526_v35  ;;  %v2591_v35 = vld [vmem:[#allocation2 + $0x88] sm:$0xff]  }
 0x5e0   :  { %v523_v38 = vpop.xlane.xlu0 %522 }
 0x5e1   :  { %v531_v39 = vmul.f32 1.442695, %v528_v37  ;;  %v527_v40 = vsub.f32 %v513_v29, %v523_v38  ;;  %v2588_v29 = vld [vmem:[#allocation2 + $0xa0] sm:$0xff]  }
 0x5e2   :  { %v544_v53 = vpop.permute.xlu1 %543  ;;  %v2592_v37 = vld [vmem:[#allocation2 + $0x80] sm:$0xff]  }
 0x5e3   :  { %2647 = vpow2.f32 %v531_v39  ;;  %v529_v41 = vmul.f32 1.442695, %v527_v40 }
 0x5e5   :  { %2649 = vpow2.f32 %v529_v41 }
 0x5f0   :  { %v2648_v44 = vpop.eup %2647 }
 0x5f1   :  { %v536_v46 = vsel %vm236_vm2, %v2648_v44, 0.0 }
 0x5f2   :  { %v2650_v47 = vpop.eup %2649  ;;  %537 = vadd.xlane.f32.xlu0 %v536_v46 }
 0x5f3   :  { %v533_v49 = vsel %vm236_vm2, %v2650_v47, 0.0 }
 0x5f6   :  { %534 = vadd.xlane.f32.xlu0 %v533_v49 }
 0x60c   :  { %545 = vrot.lane.b32.xlu0 %v2836_v51, %s2747_s6  ;;  %v2583_v51 = vld [vmem:[#allocation2 + $0x48] sm:$0xff]  }
 0x67b   :  { %v538_v48 = vpop.xlane.xlu0 %537 }
 0x67c   :  { %2651 = vrcp.f32 %v538_v48 }
 0x67f   :  { %v535_v50 = vpop.xlane.xlu0 %534 }
 0x680   :  { %2653 = vrcp.f32 %v535_v50 }
 0x683   :  { %v546_v52 = vpop.permute.xlu0 %545 }
 0x684   :  { %2366 = vmatprep.subr.mxu1 %v546_v52 }
 0x685   :  { %2367 = vmatpush3.msra.mxu1 %v546_v52  ;;  %v771_v52 = vsub.s32 5, %v2801_v30 }
 0x686   :  { %2368 = vmatprep.subr.mxu1 %v544_v53 }
 0x687   :  { %2369 = vmatpush3.msra.mxu1 %v544_v53 }
 0x688   :  { %2373 = vmatprep.subr.bf16.mxu1 %v2742_v2 }
 0x689   :  { %v2652_v54 = vpop.eup %2651 }
 0x68a   :  { %v542_v59 = vmul.f32 %v2652_v54, %v2648_v44 }
 0x68d   :  { %v2654_v56 = vpop.eup %2653 }
 0x68e   :  { %v540_v58 = vmul.f32 %v2654_v56, %v2650_v47  ;;  %v765_v47 = vsub.s32 4, %v2801_v30 }
 0x690   :  { %2370 = vmatprep.mubr.msk.f32.mxu1 %vm236_vm2, %v540_v58  ;;  %v766_v50 = vrot.slane %v2809_v32, %v765_v47  ;;  %v772_v58 = vrot.slane %v2809_v32, %v771_v52 }
 0x691   :  { %2371 = vmatmul.mubr.msk.f32.vlgmr.msra.gmra.mxu1 %vm236_vm2, %v542_v59 }
 0x692   :  { %2375 = vmatprep.mubr.msk.bf16.mxu1 %vm2743_vm1, %v2742_v2  ;;  %2374 = vmatpush3.bf16.msra.mxu1 %v2583_v51 }
 0x693   :  { %2379 = vmatprep.subr.bf16.mxu1 %v2742_v2 }
 0x751   :  { %v2372_v60 = vpop.f32.mrf.mxu1 }
 0x753   :  { %v621_v61 = vpop.f32.mrf.mxu1 }
 0x754   :  { %v630_v63 = vpack.c.bf16 %v2372_v60, %v621_v61 }
 0x756   :  { %2376 = vmatmul.mubr.msk.bf16.vlgmr.msra.gmra.mxu1 %vm236_vm2, %v630_v63  ;;  %v2594_v63 = vld [vmem:[#allocation2 + $0xf0] sm:$0xff]  }
 0x757   :  { %2380 = vmatpush3.bf16.msra.mxu1 %v2584_v62  ;;  %2381 = vmatprep.mubr.msk.bf16.mxu1 %vm2743_vm1, %v2742_v2  ;;  %v2593_v62 = vld [vmem:[#allocation2 + $0xf8] sm:$0xff]  }
 0x758   :  { %2405 = vmatprep.subr.bf16.mxu1 %v2742_v2 }
 0x75e   :  { %2382 = vmatmul.mubr.msk.bf16.vlgmr.msra.gmra.mxu1 %vm236_vm2, %v429_v25 }
 0x75f   :  { %2421 = vmatprep.mubr.msk.bf16.mxu1 %vm2743_vm1, %v2742_v2  ;;  %2406 = vmatpush3.bf16.msra.mxu1 %v2593_v62 }
 0x760   :  { %2407 = vmatprep.subr.bf16.mxu1 %v2742_v2 }
 0x763   :  { %2408 = vmatpush3.bf16.msra.mxu1 %v2594_v63 }
 0x764   :  { %2409 = vmatprep.subr.bf16.mxu1 %v2742_v2 }
 0x816   :  { %v674_v0 = vpop.f32.mrf.mxu1 }
 0x818   :  { %v2377_v1 = vpop.f32.mrf.mxu1 }
 0x819   :  { %v2596_v1 = vld [vmem:[#allocation2 + $0xe0] sm:$0xff]  }
 0x81a   :  { %v677_v4 = vpop.f32.mrf.mxu1 }
 0x81c   :  { %v2378_v5 = vpop.f32.mrf.mxu1 }
 0x81d   :  { %v2598_v5 = vld [vmem:[#allocation2 + $0xd0] sm:$0xff]  }
 0x81e   :  { %v724_v7 = vpop.f32.mrf.mxu1 }
 0x81f   :  { %v725_v9 = vadd.f32 %v724_v7, %v674_v0  ;;  %v2595_v0 = vld [vmem:[#allocation2 + $0xe8] sm:$0xff]   ;;  %v2600_v7 = vld [vmem:[#allocation2 + $0xc0] sm:$0xff]  }
 0x820   :  { %v2383_v10 = vpop.f32.mrf.mxu1  ;;  %2410 = vmatpush3.bf16.msra.mxu1 %v2595_v0 }
 0x821   :  { %v735_v11 = vadd.f32 %v734_v6, %v725_v9  ;;  %2411 = vmatprep.subr.bf16.mxu1 %v2742_v2  ;;  %v778_v9 = vsub.s32 6, %v2801_v30 }
 0x822   :  { %v727_v12 = vpop.f32.mrf.mxu1 }
 0x823   :  { %v728_v13 = vadd.f32 %v727_v12, %v677_v4  ;;  %v737_v14 = vadd.f32 %v735_v11, %v2818_v42  ;;  %v2597_v4 = vld [vmem:[#allocation2 + $0xd8] sm:$0xff]   ;;  %v779_v10 = vrot.slane %v2809_v32, %v778_v9 }
 0x824   :  { %v2384_v15 = vpop.f32.mrf.mxu1  ;;  %2412 = vmatpush3.bf16.msra.mxu1 %v2596_v1 }
 0x825   :  { %v736_v16 = vadd.f32 %v734_v6, %v728_v13  ;;  %739 = vadd.xlane.f32.xlu1 %v737_v14  ;;  %2413 = vmatprep.subr.bf16.mxu1 %v2742_v2  ;;  %v2599_v6 = vld [vmem:[#allocation2 + $0xc8] sm:$0xff]  }
 0x827   :  { %v738_v17 = vadd.f32 %v736_v16, %v2820_v43  ;;  %v2586_v43 = vld [vmem:[#allocation2 + $0xb0] sm:$0xff]  }
 0x828   :  { %2388 = vmatpush3.bf16.msra.mxu0 %v2586_v43  ;;  %2414 = vmatpush3.bf16.msra.mxu1 %v2597_v4  ;;  %v2603_v4 = vld [vmem:[#allocation2 + $0x128] sm:$0xff]  }
 0x829   :  { %741 = vadd.xlane.f32.xlu0 %v738_v17  ;;  %2389 = vmatprep.subr.bf16.mxu0 %v2742_v2 }
 0x82a   :  { %2415 = vmatprep.subr.bf16.mxu1 %v2742_v2 }
 0x82c   :  { %2390 = vmatpush3.bf16.msra.mxu0 %v2587_v28  ;;  %2416 = vmatpush3.bf16.msra.mxu1 %v2598_v5  ;;  %v2604_v5 = vld [vmem:[#allocation2 + $0x120] sm:$0xff]  }
 0x82d   :  { %2391 = vmatprep.subr.bf16.mxu0 %v2742_v2  ;;  %2417 = vmatprep.subr.bf16.mxu1 %v2742_v2 }
 0x830   :  { %2392 = vmatpush3.bf16.msra.mxu0 %v2588_v29  ;;  %2418 = vmatpush3.bf16.msra.mxu1 %v2599_v6  ;;  %v2605_v6 = vld [vmem:[#allocation2 + $0x118] sm:$0xff]  }
 0x831   :  { %2393 = vmatprep.subr.bf16.mxu0 %v2742_v2  ;;  %2419 = vmatprep.subr.bf16.mxu1 %v2742_v2 }
 0x834   :  { %2394 = vmatpush3.bf16.msra.mxu0 %v2589_v33  ;;  %2420 = vmatpush3.bf16.msra.mxu1 %v2600_v7  ;;  %v2606_v7 = vld [vmem:[#allocation2 + $0x110] sm:$0xff]  }
 0x835   :  { %2395 = vmatprep.subr.bf16.mxu0 %v2742_v2 }
 0x838   :  { %2396 = vmatpush3.bf16.msra.mxu0 %v2590_v34 }
 0x839   :  { %2397 = vmatprep.subr.bf16.mxu0 %v2742_v2 }
 0x83c   :  { %2398 = vmatpush3.bf16.msra.mxu0 %v2591_v35 }
 0x83d   :  { %2399 = vmatprep.subr.bf16.mxu0 %v2742_v2 }
 0x840   :  { %2400 = vmatpush3.bf16.msra.mxu0 %v2592_v37 }
 0x841   :  { %2425 = vmatprep.subr.bf16.mxu0 %v2742_v2 }
 0x8ae   :  { %v740_v19 = vpop.xlane.xlu1 %739 }
 0x8af   :  { %v743_v20 = vmul.f32 0.03125, %v740_v19 }
 0x8b1   :  { %v745_v21 = vsub.f32 %v737_v14, %v743_v20 }
 0x8b2   :  { %v742_v22 = vpop.xlane.xlu0 %741 }
 0x8b3   :  { %v744_v23 = vmul.f32 0.03125, %v742_v22  ;;  %v747_v24 = vmul.f32 %v2788_v8, %v745_v21 }
 0x8b5   :  { %v746_v25 = vsub.f32 %v738_v17, %v744_v23  ;;  %v749_v26 = vmul.f32 %v747_v24, %v747_v24 }
 0x8b7   :  { %751 = vadd.xlane.f32.xlu0 %v749_v26  ;;  %v748_v42 = vmul.f32 %v2788_v8, %v746_v25 }
 0x8b9   :  { %v750_v27 = vmul.f32 %v748_v42, %v748_v42 }
 0x8bb   :  { %753 = vadd.xlane.f32.xlu1 %v750_v27 }
 0x940   :  { %v752_v38 = vpop.xlane.xlu0 %751 }
 0x941   :  { %v755_v39 = vmul.f32 0.03125, %v752_v38  ;;  %v890_v38 = vsub.s32 7, %v2801_v30 }
 0x943   :  { %v757_v40 = vadd.f32 1e-12, %v755_v39  ;;  %v891_v39 = vrot.slane %v2809_v32, %v890_v38 }
 0x944   :  { %v754_v41 = vpop.xlane.xlu1 %753 }
 0x945   :  { %2655 = vrsqrt.f32 %v757_v40  ;;  %v756_v44 = vmul.f32 0.03125, %v754_v41 }
 0x947   :  { %v758_v46 = vadd.f32 1e-12, %v756_v44 }
 0x949   :  { %2657 = vrsqrt.f32 %v758_v46 }
 0x952   :  { %v2656_v49 = vpop.eup %2655 }
 0x953   :  { %v761_v48 = vmul.f32 %v2656_v49, %v747_v24 }
 0x955   :  { %v767_v56 = vmul.f32 %v766_v50, %v761_v48 }
 0x956   :  { %v2658_v53 = vpop.eup %2657 }
 0x957   :  { %v762_v54 = vmul.f32 %v2658_v53, %v748_v42  ;;  %v2929_v51 = vadd.f32 %v772_v58, %v767_v56 }
 0x959   :  { %v768_v59 = vmul.f32 %v766_v50, %v762_v54  ;;  %v2601_v54 = vld [vmem:[#allocation2 + $0x138] sm:$0xff]  }
 0x95b   :  { %v2931_v60 = vadd.f32 %v772_v58, %v768_v59 }
 0x95d   :  { %v775_v61 = vpack.c.bf16 %v2931_v60, %v2929_v51 }
 0x95f   :  { %2402 = vmatmul.mubr.bf16.vlgmr.msra.gmra.mxu0 %v775_v61 }
 0x960   :  { %2441 = vmatprep.mubr.msk.bf16.mxu0 %vm2743_vm1, %v2742_v2  ;;  %2426 = vmatpush3.bf16.msra.mxu0 %v2601_v54 }
 0x961   :  { %2427 = vmatprep.subr.bf16.mxu0 %v2742_v2 }
 0xa1f   :  { %v862_v11 = vpop.f32.mrf.mxu0 }
 0xa20   :  { %v863_v12 = vadd.f32 %v862_v11, %v779_v10  ;;  %v2608_v11 = vld [vmem:[#allocation2 + $0x100] sm:$0xff]  }
 0xa21   :  { %v2403_v13 = vpop.f32.mrf.mxu0 }
 0xa22   :  { %v871_v14 = vmul.f32 0.044715, %v863_v12  ;;  %v869_v28 = vmul.f32 0.5, %v863_v12 }
 0xa23   :  { %v865_v15 = vpop.f32.mrf.mxu0 }
 0xa24   :  { %v873_v16 = vmul.f32 %v871_v14, %v863_v12  ;;  %v866_v17 = vadd.f32 %v865_v15, %v779_v10  ;;  %v2607_v10 = vld [vmem:[#allocation2 + $0x108] sm:$0xff]  }
 0xa25   :  { %v2404_v18 = vpop.f32.mrf.mxu0 }
 0xa26   :  { %v875_v19 = vmul.f32 %v873_v16, %v863_v12  ;;  %v872_v20 = vmul.f32 0.044715, %v866_v17  ;;  %v870_v29 = vmul.f32 0.5, %v866_v17  ;;  %v2967_v18 = vld [vmem:[%s3123_s3 + $0x8] sm:$0xff] }
 0xa28   :  { %v877_v21 = vadd.f32 %v875_v19, %v863_v12  ;;  %v874_v22 = vmul.f32 %v872_v20, %v866_v17 }
 0xa2a   :  { %v879_v23 = vmul.f32 0.7978846, %v877_v21  ;;  %v876_v24 = vmul.f32 %v874_v22, %v866_v17  ;;  %v1010_v21 = vrot.slane %v2967_v18, %v2804_v31 }
 0xa2c   :  { %2659 = vtanh.f32 %v879_v23  ;;  %v878_v25 = vadd.f32 %v876_v24, %v866_v17 }
 0xa2e   :  { %v880_v26 = vmul.f32 0.7978846, %v878_v25  ;;  %v1016_v25 = vrot.slane %v2967_v18, %v2814_v36 }
 0xa30   :  { %2661 = vtanh.f32 %v880_v26 }
 0xa39   :  { %v2660_v42 = vpop.eup %2659 }
 0xa3a   :  { %v883_v27 = vadd.f32 1.0, %v2660_v42 }
 0xa3c   :  { %v885_v34 = vmul.f32 %v883_v27, %v869_v28  ;;  %v1079_v28 = vrot.slane %v2967_v18, %v139_v45 }
 0xa3d   :  { %v2662_v43 = vpop.eup %2661 }
 0xa3e   :  { %v884_v33 = vadd.f32 1.0, %v2662_v43 }
 0xa40   :  { %v886_v35 = vmul.f32 %v884_v33, %v870_v29 }
 0xa42   :  { %v887_v37 = vpack.c.bf16 %v886_v35, %v885_v34 }
 0xa44   :  { %2422 = vmatmul.mubr.bf16.vlgmr.msra.gmra.mxu1 %v887_v37 }
 0xb04   :  { %v974_v40 = vpop.f32.mrf.mxu1 }
 0xb05   :  { %v975_v41 = vadd.f32 %v974_v40, %v891_v39 }
 0xb06   :  { %v2423_v44 = vpop.f32.mrf.mxu1 }
 0xb07   :  { %v981_v46 = vadd.f32 %v975_v41, %v2929_v51 }
 0xb08   :  { %v977_v49 = vpop.f32.mrf.mxu1 }
 0xb09   :  { %v978_v48 = vadd.f32 %v977_v49, %v891_v39  ;;  %983 = vadd.xlane.f32.xlu0 %v981_v46 }
 0xb0a   :  { %v2424_v50 = vpop.f32.mrf.mxu1 }
 0xb0b   :  { %v982_v53 = vadd.f32 %v978_v48, %v2931_v60  ;;  %v2602_v60 = vld [vmem:[#allocation2 + $0x130] sm:$0xff]  }
 0xb0c   :  { %2428 = vmatpush3.bf16.msra.mxu0 %v2602_v60 }
 0xb0d   :  { %985 = vadd.xlane.f32.xlu1 %v982_v53  ;;  %2429 = vmatprep.subr.bf16.mxu0 %v2742_v2 }
 0xb10   :  { %2430 = vmatpush3.bf16.msra.mxu0 %v2603_v4 }
 0xb11   :  { %2431 = vmatprep.subr.bf16.mxu0 %v2742_v2 }
 0xb14   :  { %2432 = vmatpush3.bf16.msra.mxu0 %v2604_v5 }
 0xb15   :  { %2433 = vmatprep.subr.bf16.mxu0 %v2742_v2 }
 0xb18   :  { %2434 = vmatpush3.bf16.msra.mxu0 %v2605_v6 }
 0xb19   :  { %2435 = vmatprep.subr.bf16.mxu0 %v2742_v2 }
 0xb1c   :  { %2436 = vmatpush3.bf16.msra.mxu0 %v2606_v7 }
 0xb1d   :  { %2437 = vmatprep.subr.bf16.mxu0 %v2742_v2 }
 0xb20   :  { %2438 = vmatpush3.bf16.msra.mxu0 %v2607_v10 }
 0xb21   :  { %2439 = vmatprep.subr.bf16.mxu0 %v2742_v2 }
 0xb24   :  { %2440 = vmatpush3.bf16.msra.mxu0 %v2608_v11 }
 0xb25   :  { %2479 = vmatprep.subr.bf16.mxu0 %v2742_v2 }
 0xb92   :  { %v984_v56 = vpop.xlane.xlu0 %983 }
 0xb93   :  { %v987_v58 = vmul.f32 0.03125, %v984_v56 }
 0xb95   :  { %v989_v59 = vsub.f32 %v981_v46, %v987_v58 }
 0xb96   :  { %v986_v32 = vpop.xlane.xlu1 %985 }
 0xb97   :  { %v988_v61 = vmul.f32 0.03125, %v986_v32  ;;  %v991_v62 = vmul.f32 %v2788_v8, %v989_v59 }
 0xb99   :  { %v990_v63 = vsub.f32 %v982_v53, %v988_v61  ;;  %v993_v51 = vmul.f32 %v991_v62, %v991_v62 }
 0xb9b   :  { %995 = vadd.xlane.f32.xlu0 %v993_v51  ;;  %v992_v0 = vmul.f32 %v2788_v8, %v990_v63 }
 0xb9d   :  { %v994_v1 = vmul.f32 %v992_v0, %v992_v0 }
 0xb9f   :  { %997 = vadd.xlane.f32.xlu1 %v994_v1 }
 0xc24   :  { %v996_v12 = vpop.xlane.xlu0 %995 }
 0xc25   :  { %v999_v13 = vmul.f32 0.03125, %v996_v12 }
 0xc27   :  { %v1001_v14 = vadd.f32 1e-12, %v999_v13 }
 0xc28   :  { %v998_v15 = vpop.xlane.xlu1 %997 }
 0xc29   :  { %2663 = vrsqrt.f32 %v1001_v14  ;;  %v1000_v16 = vmul.f32 0.03125, %v998_v15  ;;  %v2609_v15 = vld [vmem:[#allocation2 + $0x140] sm:$0xff]  }
 0xc2b   :  { %v1002_v17 = vadd.f32 1e-12, %v1000_v16 }
 0xc2d   :  { %2665 = vrsqrt.f32 %v1002_v17 }
 0xc36   :  { %v2664_v19 = vpop.eup %2663 }
 0xc37   :  { %v1005_v20 = vmul.f32 %v2664_v19, %v991_v62 }
 0xc39   :  { %v1011_v24 = vmul.f32 %v1010_v21, %v1005_v20 }
 0xc3a   :  { %v2666_v22 = vpop.eup %2665 }
 0xc3b   :  { %v1006_v23 = vmul.f32 %v2666_v22, %v992_v0  ;;  %v2973_v42 = vadd.f32 %v1016_v25, %v1011_v24 }
 0xc3d   :  { %v1012_v26 = vmul.f32 %v1010_v21, %v1006_v23 }
 0xc3f   :  { %v2975_v27 = vadd.f32 %v1016_v25, %v1012_v26 }
 0xc41   :  { %v1075_v43 = vpack.c.bf16 %v2975_v27, %v2973_v42 }
 0xc43   :  { %2442 = vmatmul.mubr.bf16.vlgmr.msra.gmra.mxu0 %v1075_v43 }
 0xc44   :  { %2481 = vmatprep.mubr.msk.bf16.mxu0 %vm2743_vm1, %v2742_v2  ;;  %2480 = vmatpush3.bf16.msra.mxu0 %v2609_v15 }
 0xc45   :  { %2505 = vmatprep.subr.bf16.mxu0 %v2742_v2 }
 0xd03   :  { %v1162_v29 = vpop.f32.mrf.mxu0 }
 0xd04   :  { %v2984_v33 = vadd.f32 %v1162_v29, %v1079_v28 }
 0xd05   :  { %v2443_v34 = vpop.f32.mrf.mxu0 }
 0xd06   :  { %1171 = vrot.lane.b32.xlu1 %v2984_v33, %s2744_s26  ;;  %2449 = vmatprep.mubr.msk.f32.mxu1 %vm236_vm2, %v2984_v33 }
 0xd07   :  { %v1165_v35 = vpop.f32.mrf.mxu0 }
 0xd08   :  { %v2990_v37 = vadd.f32 %v1165_v35, %v1079_v28 }
 0xd09   :  { %v2444_v39 = vpop.f32.mrf.mxu0 }
 0xd0a   :  { %1173 = vrot.lane.b32.xlu0 %v2990_v37, %s2744_s26 }
 0xd78   :  { %v1172_v45 = vpop.permute.xlu1 %1171 }
 0xd7c   :  { %v1174_v40 = vpop.permute.xlu0 %1173 }
 0xd7d   :  { %2445 = vmatprep.subr.msk.mxu1 %vm236_vm2, %v1174_v40 }
 0xd7e   :  { %2446 = vmatpush3.xpose.msk.msra.mxu1 %vm236_vm2, %v1174_v40 }
 0xd7f   :  { %2447 = vmatprep.subr.msk.mxu1 %vm236_vm2, %v1172_v45 }
 0xd82   :  { %2448 = vmatpush3.xpose.msk.msra.mxu1 %vm236_vm2, %v1172_v45 }
 0xd85   :  { %2450 = vmatmul.mubr.msk.f32.vlgmr.msra.gmra.mxu1 %vm236_vm2, %v2990_v37 }
 0xe45   :  { %v2451_v41 = vpop.f32.mrf.mxu1 }
 0xe46   :  { %v1255_v44 = vadd.f32 %v2451_v41, %v2849_v55 }
 0xe47   :  { %v1249_v46 = vpop.f32.mrf.mxu1 }
 0xe48   :  { %v1250_v49 = vadd.f32 %v1249_v46, %v2854_v57  ;;  %v1261_v48 = vsel %vm236_vm2, %v1255_v44, -inf }
 0xe49   :  { %1262 = vmax.xlane.f32.xlu0 %v1261_v48 }
 0xe4a   :  { %v1258_v50 = vsel %vm236_vm2, %v1250_v49, -inf }
 0xe4b   :  { %1259 = vmax.xlane.f32.xlu1 %v1258_v50 }
 0xed2   :  { %v1263_v53 = vpop.xlane.xlu0 %1262 }
 0xed3   :  { %v1265_v54 = vsub.f32 %v1255_v44, %v1263_v53 }
 0xed4   :  { %v1260_v56 = vpop.xlane.xlu1 %1259 }
 0xed5   :  { %v1268_v58 = vmul.f32 1.442695, %v1265_v54  ;;  %v1264_v59 = vsub.f32 %v1250_v49, %v1260_v56 }
 0xed7   :  { %2667 = vpow2.f32 %v1268_v58  ;;  %v1266_v32 = vmul.f32 1.442695, %v1264_v59  ;;  %v2610_v58 = vld [vmem:[#allocation2 + $0x148] sm:$0xff]  }
 0xed9   :  { %2669 = vpow2.f32 %v1266_v32 }
 0xee4   :  { %v2668_v61 = vpop.eup %2667 }
 0xee5   :  { %v1273_v62 = vsel %vm236_vm2, %v2668_v61, 0.0 }
 0xee6   :  { %v2670_v63 = vpop.eup %2669  ;;  %1274 = vadd.xlane.f32.xlu1 %v1273_v62  ;;  %v1672_v62 = vrot.slane %v2967_v18, %v733_v3 }
 0xee7   :  { %v1270_v51 = vsel %vm236_vm2, %v2670_v63, 0.0 }
 0xee8   :  { %1271 = vadd.xlane.f32.xlu0 %v1270_v51 }
 0xef7   :  { %1280 = vrot.lane.b32.xlu1 %v2984_v33, %s2740_s18 }
 0xefb   :  { %1374 = vrot.lane.b32.xlu1 %v2990_v37, %s2745_s1 }
 0xefe   :  { %1282 = vrot.lane.b32.xlu0 %v2990_v37, %s2740_s18 }
 0xeff   :  { %1372 = vrot.lane.b32.xlu1 %v2984_v33, %s2745_s1 }
 0xf02   :  { %1368 = vrot.lane.b32.xlu0 %v2984_v33, %s2746_s5 }
 0xf03   :  { %1370 = vrot.lane.b32.xlu1 %v2990_v37, %s2746_s5 }
 0xf6f   :  { %v1275_v0 = vpop.xlane.xlu1 %1274 }
 0xf70   :  { %2671 = vrcp.f32 %v1275_v0 }
 0xf71   :  { %v1272_v1 = vpop.xlane.xlu0 %1271 }
 0xf72   :  { %2673 = vrcp.f32 %v1272_v1 }
 0xf73   :  { %v1281_v60 = vpop.permute.xlu1 %1280 }
 0xf75   :  { %v1283_v4 = vpop.permute.xlu0 %1282 }
 0xf76   :  { %2452 = vmatprep.subr.mxu1 %v1283_v4 }
 0xf77   :  { %2453 = vmatpush3.msra.mxu1 %v1283_v4  ;;  %v1375_v5 = vpop.permute.xlu1 %1374 }
 0xf78   :  { %2454 = vmatprep.subr.mxu1 %v1281_v60 }
 0xf79   :  { %2455 = vmatpush3.msra.mxu1 %v1281_v60  ;;  %v1369_v12 = vpop.permute.xlu0 %1368 }
 0xf7a   :  { %2459 = vmatprep.subr.msk.mxu1 %vm236_vm2, %v1375_v5 }
 0xf7b   :  { %v1373_v13 = vpop.permute.xlu1 %1372 }
 0xf7d   :  { %v2672_v6 = vpop.eup %2671 }
 0xf7e   :  { %v1279_v11 = vmul.f32 %v2672_v6, %v2668_v61 }
 0xf7f   :  { %v2674_v7 = vpop.eup %2673  ;;  %v1371_v14 = vpop.permute.xlu1 %1370 }
 0xf80   :  { %v1277_v10 = vmul.f32 %v2674_v7, %v2670_v63 }
 0xf82   :  { %2456 = vmatprep.mubr.msk.f32.mxu1 %vm236_vm2, %v1277_v10 }
 0xf83   :  { %2457 = vmatmul.mubr.msk.f32.vlgmr.msra.gmra.mxu1 %vm236_vm2, %v1279_v11  ;;  %v2611_v11 = vld [vmem:[#allocation2 + $0x1b8] sm:$0xff]  }
 0xf84   :  { %2460 = vmatpush3.xpose.msk.msra.mxu1 %vm236_vm2, %v1375_v5  ;;  %2463 = vmatprep.mubr.msk.f32.mxu1 %vm236_vm2, %v1369_v12 }
 0xf85   :  { %2461 = vmatprep.subr.msk.mxu1 %vm236_vm2, %v1373_v13 }
 0xf88   :  { %2462 = vmatpush3.xpose.msk.msra.mxu1 %vm236_vm2, %v1373_v13 }
 0xf8b   :  { %2464 = vmatmul.mubr.msk.f32.vlgmr.msra.gmra.mxu1 %vm236_vm2, %v1371_v14 }
0x1043   :  { %v2458_v16 = vpop.f32.mrf.mxu1 }
0x1045   :  { %v1358_v17 = vpop.f32.mrf.mxu1 }
0x1046   :  { %v1367_v19 = vpack.c.bf16 %v2458_v16, %v1358_v17 }
0x1048   :  { %2482 = vmatmul.mubr.msk.bf16.vlgmr.msra.gmra.mxu0 %vm236_vm2, %v1367_v19 }
0x1049   :  { %2521 = vmatprep.mubr.msk.bf16.mxu0 %vm2743_vm1, %v2742_v2 }
0x104b   :  { %v2465_v20 = vpop.f32.mrf.mxu1 }
0x104c   :  { %v1456_v21 = vadd.f32 %v2465_v20, %v2849_v55 }
0x104d   :  { %v1450_v22 = vpop.f32.mrf.mxu1 }
0x104e   :  { %v1451_v23 = vadd.f32 %v1450_v22, %v2854_v57  ;;  %v1462_v24 = vsel %vm236_vm2, %v1456_v21, -inf  ;;  %v2614_v22 = vld [vmem:[#allocation2 + $0x1a0] sm:$0xff]  }
0x104f   :  { %1463 = vmax.xlane.f32.xlu1 %v1462_v24  ;;  %v2616_v24 = vld [vmem:[#allocation2 + $0x190] sm:$0xff]  }
0x1050   :  { %v1459_v25 = vsel %vm236_vm2, %v1451_v23, -inf }
0x1051   :  { %1460 = vmax.xlane.f32.xlu0 %v1459_v25  ;;  %v2617_v25 = vld [vmem:[#allocation2 + $0x188] sm:$0xff]  }
0x1060   :  { %1481 = vrot.lane.b32.xlu1 %v2984_v33, %s2747_s6 }
0x10d8   :  { %v1464_v26 = vpop.xlane.xlu1 %1463 }
0x10d9   :  { %v1466_v43 = vsub.f32 %v1456_v21, %v1464_v26  ;;  %v2613_v21 = vld [vmem:[#allocation2 + $0x1a8] sm:$0xff]   ;;  %v2618_v26 = vld [vmem:[#allocation2 + $0x180] sm:$0xff]  }
0x10da   :  { %v1461_v28 = vpop.xlane.xlu0 %1460 }
0x10db   :  { %v1469_v29 = vmul.f32 1.442695, %v1466_v43  ;;  %v1465_v34 = vsub.f32 %v1451_v23, %v1461_v28  ;;  %v2615_v23 = vld [vmem:[#allocation2 + $0x198] sm:$0xff]  }
0x10dc   :  { %v1482_v50 = vpop.permute.xlu1 %1481 }
0x10dd   :  { %2675 = vpow2.f32 %v1469_v29  ;;  %v1467_v35 = vmul.f32 1.442695, %v1465_v34 }
0x10df   :  { %2677 = vpow2.f32 %v1467_v35 }
0x10ea   :  { %v2676_v55 = vpop.eup %2675 }
0x10eb   :  { %v1474_v57 = vsel %vm236_vm2, %v2676_v55, 0.0 }
0x10ec   :  { %v2678_v39 = vpop.eup %2677  ;;  %1475 = vadd.xlane.f32.xlu0 %v1474_v57 }
0x10ed   :  { %v1471_v40 = vsel %vm236_vm2, %v2678_v39, 0.0 }
0x10f0   :  { %1472 = vadd.xlane.f32.xlu0 %v1471_v40  ;;  %v1704_v40 = vrot.slane %v2967_v18, %v765_v47  ;;  %v2619_v47 = vld [vmem:[#allocation2 + $0x1f8] sm:$0xff]  }
0x10f1   :  { %2506 = vmatpush3.bf16.msra.mxu0 %v2619_v47 }
0x10f2   :  { %2507 = vmatprep.subr.bf16.mxu0 %v2742_v2 }
0x1106   :  { %1483 = vrot.lane.b32.xlu0 %v2990_v37, %s2747_s6 }
0x1108   :  { %v1662_v33 = vpop.f32.mrf.mxu0 }
0x110a   :  { %v2483_v45 = vpop.f32.mrf.mxu0 }
0x110c   :  { %v1665_v41 = vpop.f32.mrf.mxu0 }
0x110e   :  { %v2484_v44 = vpop.f32.mrf.mxu0 }
0x110f   :  { %v1710_v44 = vrot.slane %v2967_v18, %v771_v52  ;;  %v2621_v52 = vld [vmem:[#allocation2 + $0x1e8] sm:$0xff]  }
0x1175   :  { %v1476_v46 = vpop.xlane.xlu0 %1475 }
0x1176   :  { %2679 = vrcp.f32 %v1476_v46 }
0x1179   :  { %v1473_v49 = vpop.xlane.xlu0 %1472 }
0x117a   :  { %2681 = vrcp.f32 %v1473_v49 }
0x117d   :  { %v1484_v48 = vpop.permute.xlu0 %1483 }
0x117e   :  { %2466 = vmatprep.subr.mxu1 %v1484_v48 }
0x117f   :  { %2467 = vmatpush3.msra.mxu1 %v1484_v48 }
0x1180   :  { %2468 = vmatprep.subr.mxu1 %v1482_v50 }
0x1181   :  { %2469 = vmatpush3.msra.mxu1 %v1482_v50 }
0x1182   :  { %2473 = vmatprep.subr.bf16.mxu1 %v2742_v2 }
0x1183   :  { %v2680_v53 = vpop.eup %2679 }
0x1184   :  { %v1480_v37 = vmul.f32 %v2680_v53, %v2676_v55  ;;  %v2620_v53 = vld [vmem:[#allocation2 + $0x1f0] sm:$0xff]  }
0x1185   :  { %2508 = vmatpush3.bf16.msra.mxu0 %v2620_v53 }
0x1186   :  { %2509 = vmatprep.subr.bf16.mxu0 %v2742_v2 }
0x1187   :  { %v2682_v54 = vpop.eup %2681 }
0x1188   :  { %v1478_v56 = vmul.f32 %v2682_v54, %v2678_v39  ;;  %v2622_v54 = vld [vmem:[#allocation2 + $0x1e0] sm:$0xff]  }
0x1189   :  { %2510 = vmatpush3.bf16.msra.mxu0 %v2621_v52 }
0x118a   :  { %2470 = vmatprep.mubr.msk.f32.mxu1 %vm236_vm2, %v1478_v56  ;;  %2511 = vmatprep.subr.bf16.mxu0 %v2742_v2  ;;  %v2623_v56 = vld [vmem:[#allocation2 + $0x1d8] sm:$0xff]  }
0x118b   :  { %2471 = vmatmul.mubr.msk.f32.vlgmr.msra.gmra.mxu1 %vm236_vm2, %v1480_v37  ;;  %v2624_v37 = vld [vmem:[#allocation2 + $0x1d0] sm:$0xff]  }
0x118c   :  { %2475 = vmatprep.mubr.msk.bf16.mxu1 %vm2743_vm1, %v2742_v2  ;;  %2474 = vmatpush3.bf16.msra.mxu1 %v2610_v58  ;;  %v2625_v58 = vld [vmem:[#allocation2 + $0x1c8] sm:$0xff]  }
0x118d   :  { %2485 = vmatprep.subr.bf16.mxu1 %v2742_v2  ;;  %2512 = vmatpush3.bf16.msra.mxu0 %v2622_v54 }
0x118e   :  { %2513 = vmatprep.subr.bf16.mxu0 %v2742_v2 }
0x1191   :  { %2514 = vmatpush3.bf16.msra.mxu0 %v2623_v56 }
0x1192   :  { %2515 = vmatprep.subr.bf16.mxu0 %v2742_v2 }
0x1195   :  { %2516 = vmatpush3.bf16.msra.mxu0 %v2624_v37 }
0x1196   :  { %2517 = vmatprep.subr.bf16.mxu0 %v2742_v2 }
0x1199   :  { %2518 = vmatpush3.bf16.msra.mxu0 %v2625_v58  ;;  %v39_v58 = vld [vmem:[%s3123_s3 + $0x10] sm:$0xff]  ;;  %s2748_s3 = smov [#allocation5]  }
0x119a   :  { %2519 = vmatprep.subr.bf16.mxu0 %v2742_v2  ;;  %s2115_s11 = sshll.u32 %s2748_s3, 4  ;;  %s2116_s11 = int_to_ptr.vmem [resolvable:$true] %s2115_s11 }
0x119b   :  { %s2715_s12 = scalar_lea.vmem %s2116_s11, 32  ;;  %p2720_p6 = scmp.lt.s32.totalorder %s2116_s11, %s2116_s11 }
0x119c   :  { %p2716_p5 = scmp.ne.s32.totalorder %s2116_s11, %s2715_s12  ;;  %p2721_p7 = scmp.lt.s32.totalorder %s2715_s12, %s2715_s12 }
0x119e   :  { %p2722_p8 = por %p2721_p7, %p2720_p6 }
0x11a0   :  { %p2723_p9 = pnand %p2722_p8, %p2716_p5 }
0x124b   :  { %v2472_v59 = vpop.f32.mrf.mxu1 }
0x124d   :  { %v1559_v32 = vpop.f32.mrf.mxu1 }
0x124e   :  { %v1568_v61 = vpack.c.bf16 %v2472_v59, %v1559_v32  ;;  %v2626_v59 = vld [vmem:[#allocation2 + $0x1c0] sm:$0xff]   ;;  %v1717_v32 = vrot.slane %v2967_v18, %v778_v9 }
0x124f   :  { %2520 = vmatpush3.bf16.msra.mxu0 %v2626_v59  ;;  %v1948_v59 = vrot.slane %v39_v58, %v2804_v31 }
0x1250   :  { %2476 = vmatmul.mubr.msk.bf16.vlgmr.msra.gmra.mxu1 %vm236_vm2, %v1568_v61  ;;  %2545 = vmatprep.subr.bf16.mxu0 %v2742_v2 }
0x1251   :  { %2501 = vmatprep.mubr.msk.bf16.mxu1 %vm2743_vm1, %v2742_v2  ;;  %2486 = vmatpush3.bf16.msra.mxu1 %v2611_v11 }
0x1252   :  { %2487 = vmatprep.subr.bf16.mxu1 %v2742_v2 }
0x1310   :  { %v1612_v63 = vpop.f32.mrf.mxu1 }
0x1311   :  { %v1663_v51 = vadd.f32 %v1662_v33, %v1612_v63 }
0x1312   :  { %v2477_v0 = vpop.f32.mrf.mxu1 }
0x1313   :  { %v1673_v1 = vadd.f32 %v1672_v62, %v1663_v51 }
0x1314   :  { %v1615_v60 = vpop.f32.mrf.mxu1 }
0x1315   :  { %v1666_v4 = vadd.f32 %v1665_v41, %v1615_v60  ;;  %v1675_v5 = vadd.f32 %v1673_v1, %v2973_v42 }
0x1316   :  { %v2478_v6 = vpop.f32.mrf.mxu1 }
0x1317   :  { %v1674_v7 = vadd.f32 %v1672_v62, %v1666_v4  ;;  %1677 = vadd.xlane.f32.xlu1 %v1675_v5 }
0x1319   :  { %v1676_v10 = vadd.f32 %v1674_v7, %v2975_v27  ;;  %v2612_v27 = vld [vmem:[#allocation2 + $0x1b0] sm:$0xff]  }
0x131a   :  { %2488 = vmatpush3.bf16.msra.mxu1 %v2612_v27 }
0x131b   :  { %1679 = vadd.xlane.f32.xlu0 %v1676_v10  ;;  %2489 = vmatprep.subr.bf16.mxu1 %v2742_v2 }
0x131e   :  { %2490 = vmatpush3.bf16.msra.mxu1 %v2613_v21  ;;  %v1829_v21 = vrot.slane %v2967_v18, %v890_v38 }
0x131f   :  { %2491 = vmatprep.subr.bf16.mxu1 %v2742_v2 }
0x1322   :  { %2492 = vmatpush3.bf16.msra.mxu1 %v2614_v22 }
0x1323   :  { %2493 = vmatprep.subr.bf16.mxu1 %v2742_v2 }
0x1326   :  { %2494 = vmatpush3.bf16.msra.mxu1 %v2615_v23 }
0x1327   :  { %2495 = vmatprep.subr.bf16.mxu1 %v2742_v2 }
0x132a   :  { %2496 = vmatpush3.bf16.msra.mxu1 %v2616_v24 }
0x132b   :  { %2497 = vmatprep.subr.bf16.mxu1 %v2742_v2 }
0x132e   :  { %2498 = vmatpush3.bf16.msra.mxu1 %v2617_v25 }
0x132f   :  { %2499 = vmatprep.subr.bf16.mxu1 %v2742_v2 }
0x1332   :  { %2500 = vmatpush3.bf16.msra.mxu1 %v2618_v26 }
0x1333   :  { %2525 = vmatprep.subr.bf16.mxu1 %v2742_v2 }
0x13a0   :  { %v1678_v12 = vpop.xlane.xlu1 %1677 }
0x13a1   :  { %v1681_v3 = vmul.f32 0.03125, %v1678_v12 }
0x13a3   :  { %v1683_v13 = vsub.f32 %v1675_v5, %v1681_v3 }
0x13a4   :  { %v1680_v14 = vpop.xlane.xlu0 %1679 }
0x13a5   :  { %v1682_v15 = vmul.f32 0.03125, %v1680_v14  ;;  %v1685_v16 = vmul.f32 %v2788_v8, %v1683_v13 }
0x13a7   :  { %v1684_v17 = vsub.f32 %v1676_v10, %v1682_v15  ;;  %v1687_v19 = vmul.f32 %v1685_v16, %v1685_v16 }
0x13a9   :  { %1689 = vadd.xlane.f32.xlu0 %v1687_v19  ;;  %v1686_v42 = vmul.f32 %v2788_v8, %v1684_v17 }
0x13ab   :  { %v1688_v20 = vmul.f32 %v1686_v42, %v1686_v42 }
0x13ad   :  { %1691 = vadd.xlane.f32.xlu1 %v1688_v20 }
0x1432   :  { %v1690_v43 = vpop.xlane.xlu0 %1689 }
0x1433   :  { %v1693_v28 = vmul.f32 0.03125, %v1690_v43 }
0x1435   :  { %v1695_v29 = vadd.f32 1e-12, %v1693_v28 }
0x1436   :  { %v1692_v34 = vpop.xlane.xlu1 %1691 }
0x1437   :  { %2683 = vrsqrt.f32 %v1695_v29  ;;  %v1694_v35 = vmul.f32 0.03125, %v1692_v34  ;;  %v2627_v34 = vld [vmem:[#allocation2 + $0x238] sm:$0xff]  }
0x1439   :  { %v1696_v55 = vadd.f32 1e-12, %v1694_v35  ;;  %v2628_v35 = vld [vmem:[#allocation2 + $0x230] sm:$0xff]  }
0x143b   :  { %2685 = vrsqrt.f32 %v1696_v55 }
0x1444   :  { %v2684_v57 = vpop.eup %2683 }
0x1445   :  { %v1699_v39 = vmul.f32 %v2684_v57, %v1685_v16 }
0x1447   :  { %v1705_v41 = vmul.f32 %v1704_v40, %v1699_v39 }
0x1448   :  { %v2686_v33 = vpop.eup %2685 }
0x1449   :  { %v1700_v45 = vmul.f32 %v2686_v33, %v1686_v42  ;;  %v3070_v49 = vadd.f32 %v1710_v44, %v1705_v41 }
0x144b   :  { %v1706_v46 = vmul.f32 %v1704_v40, %v1700_v45 }
0x144d   :  { %v3072_v48 = vadd.f32 %v1710_v44, %v1706_v46  ;;  %v2629_v44 = vld [vmem:[#allocation2 + $0x228] sm:$0xff]   ;;  %v2630_v46 = vld [vmem:[#allocation2 + $0x220] sm:$0xff]  }
0x144f   :  { %v1713_v50 = vpack.c.bf16 %v3072_v48, %v3070_v49 }
0x1451   :  { %2502 = vmatmul.mubr.bf16.vlgmr.msra.gmra.mxu1 %v1713_v50  ;;  %v2634_v50 = vld [vmem:[#allocation2 + $0x200] sm:$0xff]  }
0x1452   :  { %2541 = vmatprep.mubr.msk.bf16.mxu1 %vm2743_vm1, %v2742_v2  ;;  %2526 = vmatpush3.bf16.msra.mxu1 %v2627_v34 }
0x1453   :  { %2527 = vmatprep.subr.bf16.mxu1 %v2742_v2 }
0x1456   :  { %2528 = vmatpush3.bf16.msra.mxu1 %v2628_v35 }
0x1457   :  { %2529 = vmatprep.subr.bf16.mxu1 %v2742_v2 }
0x145a   :  { %2530 = vmatpush3.bf16.msra.mxu1 %v2629_v44 }
0x145b   :  { %2531 = vmatprep.subr.bf16.mxu1 %v2742_v2 }
0x145e   :  { %2532 = vmatpush3.bf16.msra.mxu1 %v2630_v46 }
0x145f   :  { %2533 = vmatprep.subr.bf16.mxu1 %v2742_v2 }
0x1511   :  { %v1800_v61 = vpop.f32.mrf.mxu1 }
0x1512   :  { %v1801_v62 = vadd.f32 %v1800_v61, %v1717_v32 }
0x1513   :  { %v2503_v63 = vpop.f32.mrf.mxu1 }
0x1514   :  { %v1809_v51 = vmul.f32 0.044715, %v1801_v62  ;;  %v1807_v16 = vmul.f32 0.5, %v1801_v62 }
0x1515   :  { %v1803_v0 = vpop.f32.mrf.mxu1 }
0x1516   :  { %v1811_v1 = vmul.f32 %v1809_v51, %v1801_v62  ;;  %v1804_v60 = vadd.f32 %v1803_v0, %v1717_v32 }
0x1517   :  { %v2504_v4 = vpop.f32.mrf.mxu1 }
0x1518   :  { %v1813_v5 = vmul.f32 %v1811_v1, %v1801_v62  ;;  %v1810_v6 = vmul.f32 0.044715, %v1804_v60  ;;  %v1808_v17 = vmul.f32 0.5, %v1804_v60 }
0x151a   :  { %v1815_v7 = vadd.f32 %v1813_v5, %v1801_v62  ;;  %v1812_v10 = vmul.f32 %v1810_v6, %v1804_v60  ;;  %v2024_v6 = vrot.slane %v39_v58, 2 }
0x151c   :  { %v1817_v11 = vmul.f32 0.7978846, %v1815_v7  ;;  %v1814_v12 = vmul.f32 %v1812_v10, %v1804_v60 }
0x151e   :  { %2687 = vtanh.f32 %v1817_v11  ;;  %v1816_v3 = vadd.f32 %v1814_v12, %v1804_v60 }
0x1520   :  { %v1818_v13 = vmul.f32 0.7978846, %v1816_v3 }
0x1522   :  { %2689 = vtanh.f32 %v1818_v13 }
0x152b   :  { %v2688_v14 = vpop.eup %2687 }
0x152c   :  { %v1821_v9 = vadd.f32 1.0, %v2688_v14 }
0x152e   :  { %v1823_v42 = vmul.f32 %v1821_v9, %v1807_v16 }
0x152f   :  { %v2690_v15 = vpop.eup %2689 }
0x1530   :  { %v1822_v19 = vadd.f32 1.0, %v2690_v15 }
0x1532   :  { %v1824_v20 = vmul.f32 %v1822_v19, %v1808_v17 }
0x1534   :  { %v1825_v27 = vpack.c.bf16 %v1824_v20, %v1823_v42 }
0x1536   :  { %2522 = vmatmul.mubr.bf16.vlgmr.msra.gmra.mxu0 %v1825_v27 }
0x1537   :  { %2561 = vmatprep.mubr.msk.bf16.mxu0 %vm2743_vm1, %v2742_v2  ;;  %2546 = vmatpush3.bf16.msra.mxu0 %v2627_v34 }
0x1538   :  { %2547 = vmatprep.subr.bf16.mxu0 %v2742_v2 }
0x153b   :  { %2548 = vmatpush3.bf16.msra.mxu0 %v2628_v35 }
0x153c   :  { %2549 = vmatprep.subr.bf16.mxu0 %v2742_v2 }
0x153f   :  { %2550 = vmatpush3.bf16.msra.mxu0 %v2629_v44 }
0x1540   :  { %2551 = vmatprep.subr.bf16.mxu0 %v2742_v2 }
0x1543   :  { %2552 = vmatpush3.bf16.msra.mxu0 %v2630_v46 }
0x1544   :  { %2553 = vmatprep.subr.bf16.mxu0 %v2742_v2 }
0x15f6   :  { %v1912_v22 = vpop.f32.mrf.mxu0 }
0x15f7   :  { %v1913_v23 = vadd.f32 %v1912_v22, %v1829_v21 }
0x15f8   :  { %v2523_v24 = vpop.f32.mrf.mxu0 }
0x15f9   :  { %v1919_v25 = vadd.f32 %v1913_v23, %v3070_v49  ;;  %v2631_v49 = vld [vmem:[#allocation2 + $0x218] sm:$0xff]  }
0x15fa   :  { %v1915_v26 = vpop.f32.mrf.mxu0  ;;  %2534 = vmatpush3.bf16.msra.mxu1 %v2631_v49  ;;  %2554 = vmatpush3.bf16.msra.mxu0 %v2631_v49 }
0x15fb   :  { %v1916_v43 = vadd.f32 %v1915_v26, %v1829_v21  ;;  %1921 = vadd.xlane.f32.xlu0 %v1919_v25  ;;  %2535 = vmatprep.subr.bf16.mxu1 %v2742_v2 }
0x15fc   :  { %v2524_v28 = vpop.f32.mrf.mxu0  ;;  %2555 = vmatprep.subr.bf16.mxu0 %v2742_v2 }
0x15fd   :  { %v1920_v29 = vadd.f32 %v1916_v43, %v3072_v48  ;;  %v2632_v48 = vld [vmem:[#allocation2 + $0x210] sm:$0xff]  }
0x15fe   :  { %2536 = vmatpush3.bf16.msra.mxu1 %v2632_v48  ;;  %2556 = vmatpush3.bf16.msra.mxu0 %v2632_v48 }
0x15ff   :  { %1923 = vadd.xlane.f32.xlu1 %v1920_v29  ;;  %2537 = vmatprep.subr.bf16.mxu1 %v2742_v2 }
0x1600   :  { %2557 = vmatprep.subr.bf16.mxu0 %v2742_v2 }
0x1684   :  { %v1922_v30 = vpop.xlane.xlu0 %1921 }
0x1685   :  { %v1925_v38 = vmul.f32 0.03125, %v1922_v30 }
0x1687   :  { %v1927_v18 = vsub.f32 %v1919_v25, %v1925_v38 }
0x1688   :  { %v1924_v55 = vpop.xlane.xlu1 %1923 }
0x1689   :  { %v1926_v57 = vmul.f32 0.03125, %v1924_v55  ;;  %v1929_v39 = vmul.f32 %v2788_v8, %v1927_v18 }
0x168b   :  { %v1928_v40 = vsub.f32 %v1920_v29, %v1926_v57  ;;  %v1931_v33 = vmul.f32 %v1929_v39, %v1929_v39 }
0x168d   :  { %1933 = vadd.xlane.f32.xlu0 %v1931_v33  ;;  %v1930_v45 = vmul.f32 %v2788_v8, %v1928_v40  ;;  %v2633_v8 = vld [vmem:[#allocation2 + $0x208] sm:$0xff]  }
0x168e   :  { %2538 = vmatpush3.bf16.msra.mxu1 %v2633_v8  ;;  %2558 = vmatpush3.bf16.msra.mxu0 %v2633_v8 }
0x168f   :  { %v1932_v41 = vmul.f32 %v1930_v45, %v1930_v45  ;;  %2539 = vmatprep.subr.bf16.mxu1 %v2742_v2  ;;  %2559 = vmatprep.subr.bf16.mxu0 %v2742_v2  ;;  %v1954_v2 = vrot.slane %v39_v58, %v2814_v36 }
0x1691   :  { %1935 = vadd.xlane.f32.xlu1 %v1932_v41 }
0x1692   :  { %2540 = vmatpush3.bf16.msra.mxu1 %v2634_v50  ;;  %2560 = vmatpush3.bf16.msra.mxu0 %v2634_v50 }
0x1716   :  { %v1934_v47 = vpop.xlane.xlu0 %1933 }
0x1717   :  { %v1937_v53 = vmul.f32 0.03125, %v1934_v47 }
0x1719   :  { %v1939_v52 = vadd.f32 1e-12, %v1937_v53 }
0x171a   :  { %v1936_v54 = vpop.xlane.xlu1 %1935 }
0x171b   :  { %2691 = vrsqrt.f32 %v1939_v52  ;;  %v1938_v56 = vmul.f32 0.03125, %v1936_v54 }
0x171d   :  { %v1940_v37 = vadd.f32 1e-12, %v1938_v56 }
0x171f   :  { %2693 = vrsqrt.f32 %v1940_v37 }
0x1728   :  { %v2692_v32 = vpop.eup %2691 }
0x1729   :  { %v1943_v61 = vmul.f32 %v2692_v32, %v1929_v39 }
0x172b   :  { %v1949_v62 = vmul.f32 %v1948_v59, %v1943_v61 }
0x172c   :  { %v2694_v63 = vpop.eup %2693 }
0x172d   :  { %v1955_v51 = vadd.f32 %v1954_v2, %v1949_v62  ;;  %v1944_v0 = vmul.f32 %v2694_v63, %v1930_v45 }
0x172f   :  { %v1974_v1 = vpack.c.bf16 %v1955_v51, %v1955_v51  ;;  %v1950_v60 = vmul.f32 %v1948_v59, %v1944_v0 }
0x1731   :  { %2542 = vmatmul.mubr.bf16.vlgmr.msra.gmra.mxu1 %v1974_v1  ;;  %v1956_v4 = vadd.f32 %v1954_v2, %v1950_v60 }
0x1733   :  { %v2067_v5 = vpack.c.bf16 %v1956_v4, %v1956_v4 }
0x1735   :  { %2562 = vmatmul.mubr.bf16.vlgmr.msra.gmra.mxu0 %v2067_v5 }
0x17f1   :  { %v2060_v7 = vpop.f32.mrf.mxu1 }
0x17f2   :  { %v2061_v10 = vadd.f32 %v2060_v7, %v2024_v6 }
0x17f3   :  { %v2543_v11 = vpop.f32.mrf.mxu1 }
0x17f4   :  { %2066 = vst [vmem:[#allocation5] sm:$0x1] %v2061_v10 }
0x17f5   :  { %v2063_v31 = vpop.f32.mrf.mxu1  ;;  %v2102_v12 = vpop.f32.mrf.mxu0 }
0x17f6   :  { %v2103_v36 = vadd.f32 %v2102_v12, %v2024_v6 }
0x17f7   :  { %v2544_v3 = vpop.f32.mrf.mxu1  ;;  %v2563_v13 = vpop.f32.mrf.mxu0 }
0x17f8   :  { %2108 = vst [vmem:[#allocation5 + $0x1] sm:$0x1] %v2103_v36 }
0x17f9   :  { %v2105_v14 = vpop.f32.mrf.mxu0 }
0x17fa   :  { %2726 = shalt.err (!%p2723_p9)
}
0x17fb   :  { %2118 = dma.vmem_to_hbm [thread:$0]  %s2116_s11, 32, %s3124_s4, [#allocation4]   ;;  %v2564_v9 = vpop.f32.mrf.mxu0 }
0x17fc   :  { %2737 = dma.done.wait [#allocation4], 32  }
0x17fd   :  { %2738 = vsyncadd [#allocation4], 4294967264 }
0x17fe   :  { %2122 = vsyncpa [#allocation3], 1 }
0x17ff   :  { %2123 = vsyncpa [#allocation4], 1 }

</bundles_post_ra>
